<compile_context>
chip_gen: v7x
topology: tpu7x:2x2x1
jax: 0.10.0
libtpu: 0.0.40
codegen_flags: <defaults>
</compile_context>

<pallas_src>
import functools

import jax
import jax.numpy as jnp
from jax import lax
from jax.experimental import pallas as pl
from jax.experimental.pallas import tpu as pltpu

_LANE = 128


def _round_up(x, m):
    return (x + m - 1) // m * m


def _choose_row_tile(Ho, Wo, max_rows=512):
    """Largest row tile TH (a divisor of Ho) with TH*Wo <= max_rows and
    TH*Wo a multiple of 8 (sublane-aligned output blocks)."""
    if Ho * Wo <= max_rows:
        return Ho
    for th in range(Ho, 0, -1):
        if Ho % th == 0 and th * Wo <= max_rows and (th * Wo) % 8 == 0:
            return th
    return Ho


# ----------------------------- Pallas kernel -------------------------------- #

def _conv3x3_kernel(*refs, stride, th, row_tiles, Wo, relu, has_residual):
    """One grid step: `th` output rows of a fused 3x3 conv (+folded-BN bias)
    (+residual) (+ReLU) computed as a single MXU matmul.

    x_ref   : (1, s, s, Hpp, Wpp, Cp)    bf16  phase-decomposed padded input
    res_ref : (1, th*Wo, Crp)            bf16  (optional) residual input slab
    w_ref   : (9*Cp [+ Crp], Coutp)      bf16  folded weight matrix
    b_ref   : (1, Coutp)                 f32   folded bias
    out_ref : (1, th*Wo, Coutp)
    """
    if has_residual:
        x_ref, res_ref, w_ref, b_ref, out_ref = refs
    else:
        x_ref, w_ref, b_ref, out_ref = refs

    cp = x_ref.shape[-1]
    mt = th * Wo
    if row_tiles == 1:
        base = 0                                          # static slicing path
    else:
        base = pl.multiple_of(pl.program_id(1) * th, th)

    # im2col slab: 9 unit-stride tap windows (each Cp lanes, Cp % 128 == 0)
    # concatenated along K, plus the residual slab.  Column order matches the
    # row-major (kh, kw, cin) flattening of the weight matrix.
    pieces = []
    for di in range(3):
        for dj in range(3):
            pa, qa = di % stride, di // stride
            pb, qb = dj % stride, dj // stride
            win = x_ref[0, pa, pb, pl.ds(base + qa, th), pl.ds(qb, Wo), :]
            pieces.append(win.reshape(mt, cp))
    if has_residual:
        pieces.append(res_ref[0])
    slab = jnp.concatenate(pieces, axis=-1)               # (mt, 9*Cp [+Crp])

    # Single MXU matmul: the 9-tap (and downsample) reduction lives on the MXU.
    acc = jnp.dot(slab, w_ref[...], preferred_element_type=jnp.float32)
    acc = acc + b_ref[...]
    if relu:
        acc = jnp.maximum(acc, 0.0)
    out_ref[0] = acc.astype(out_ref.dtype)


# ------------------------------ JAX glue ------------------------------------ #

def _fold_bn(bn, eps=1e-5):
    scale = bn["gamma"] / jnp.sqrt(bn["running_var"] + eps)
    bias = bn["beta"] - bn["running_mean"] * scale
    return scale, bias


def _conv3x3_weight_matrix(w_oihw, scale, cin_p, coutp):
    """OIHW (Cout,Cin,3,3) -> BN-folded, padded (9*cin_p, coutp) bf16 matrix
    whose row layout matches the kernel's tap-concatenation order."""
    Cout, Cin = w_oihw.shape[0], w_oihw.shape[1]
    w = jnp.transpose(w_oihw, (2, 3, 1, 0)) * scale[None, None, None, :]
    w = jnp.pad(w, ((0, 0), (0, 0), (0, cin_p - Cin), (0, coutp - Cout)))
    return w.reshape(9 * cin_p, coutp).astype(jnp.bfloat16)


def _phase_decompose(x_nhwc, stride):
    """Pad for a 3x3/pad=1 conv and split into stride phases (space-to-depth):
      xs[n, a, b, i, j, :] == x_padded[n, stride*i + a, stride*j + b, :]
    so each kernel tap (di, dj) is a unit-stride window of one phase plane.
    HBM footprint == the padded input (no 9x im2col inflation)."""
    N, H, W, C = x_nhwc.shape
    Ho = (H + 2 - 3) // stride + 1
    Wo = (W + 2 - 3) // stride + 1
    Hp, Wp = H + 2, W + 2
    hr, wr = (-Hp) % stride, (-Wp) % stride              # make divisible by stride
    xp = jnp.pad(x_nhwc, ((0, 0), (1, 1 + hr), (1, 1 + wr), (0, 0)))
    Hpp, Wpp = (Hp + hr) // stride, (Wp + wr) // stride
    xs = xp.reshape(N, Hpp, stride, Wpp, stride, C)
    xs = jnp.transpose(xs, (0, 2, 4, 1, 3, 5))           # (N, s, s, Hpp, Wpp, C)
    return xs, (Ho, Wo)


def _fused_conv3x3(xs, w_mat, bias, Ho, Wo, *, relu, residual=None,
                   out_dtype=jnp.bfloat16, max_rows=512):
    """pallas_call wrapper.  xs: (N, s, s, Hpp, Wpp, Cp) bf16 phase-decomposed
    input; w_mat: (9*Cp [+Crp], Coutp) bf16; bias: (Coutp,) f32; residual
    (optional): (N, Ho*Wo, Crp) bf16.  Returns (N, Ho*Wo, Coutp) in out_dtype."""
    N, s, _, Hpp, Wpp, Cp = xs.shape
    K, coutp = w_mat.shape
    m = Ho * Wo
    th = _choose_row_tile(Ho, Wo, max_rows)
    T = Ho // th
    mt = th * Wo
    b = bias.reshape(1, coutp).astype(jnp.float32)

    # Whole (padded) image fetched once per batch index (index map is constant
    # over the row-tile axis, so it is not re-DMA'd across row tiles).
    in_specs = [pl.BlockSpec((1, s, s, Hpp, Wpp, Cp),
                             lambda n, t: (n, 0, 0, 0, 0, 0))]
    args = [xs]
    has_res = residual is not None
    if has_res:
        crp = residual.shape[-1]
        in_specs.append(pl.BlockSpec((1, mt, crp), lambda n, t: (n, t, 0)))
        args.append(residual)
    # Weight / bias index maps are constant across the whole grid.
    in_specs += [pl.BlockSpec((K, coutp), lambda n, t: (0, 0)),
                 pl.BlockSpec((1, coutp), lambda n, t: (0, 0))]
    args += [w_mat, b]

    kernel = functools.partial(
        _conv3x3_kernel, stride=s, th=th, row_tiles=T, Wo=Wo, relu=relu,
        has_residual=has_res)

    return pl.pallas_call(
        kernel,
        out_shape=jax.ShapeDtypeStruct((N, m, coutp), out_dtype),
        grid_spec=pltpu.PrefetchScalarGridSpec(
            num_scalar_prefetch=0,
            grid=(N, T),
            in_specs=in_specs,
            out_specs=pl.BlockSpec((1, mt, coutp), lambda n, t: (n, t, 0)),
        ),
        compiler_params=pltpu.CompilerParams(
            dimension_semantics=("parallel", "parallel"),
            # Explicit budget; blocks above stay far under the 64 MiB v7x VMEM.
            vmem_limit_bytes=32 * 1024 * 1024),
    )(*args)


def resnet_block_forward(x_nchw, params, stride):
    """Forward pass of ResNetBlock.  Input/output are NCHW float32."""
    N, Cin, H, W = x_nchw.shape
    Cout = params["conv1_w"].shape[0]
    cin_p = _round_up(Cin, _LANE)
    coutp = _round_up(Cout, _LANE)

    # NHWC bf16, channels lane-padded so every in-kernel concat piece is
    # a multiple of 128 lanes.
    x = jnp.transpose(x_nchw, (0, 2, 3, 1)).astype(jnp.bfloat16)
    x = jnp.pad(x, ((0, 0), (0, 0), (0, 0), (0, cin_p - Cin)))

    # ---- conv1 (3x3, stride, pad 1) + bn1 + ReLU : one kernel, one matmul ----
    s1, b1 = _fold_bn(params["bn1"])
    w1 = _conv3x3_weight_matrix(params["conv1_w"], s1, cin_p, coutp)
    xs1, (Ho, Wo) = _phase_decompose(x, stride)
    h = _fused_conv3x3(xs1, w1, jnp.pad(b1, (0, coutp - Cout)), Ho, Wo,
                       relu=True)                        # (N, Ho*Wo, coutp) bf16

    # ---- residual branch: folded into conv2's matmul as extra K rows ----
    s2, b2 = _fold_bn(params["bn2"])
    if stride != 1:
        sd, bd = _fold_bn(params["bn_d"])
        wres = params["down_w"].reshape(Cout, Cin).T * sd[None, :]
        wres = jnp.pad(wres, ((0, cin_p - Cin), (0, coutp - Cout)))
        xres = x[:, ::stride, ::stride, :][:, :Ho, :Wo, :]
        bias2 = b2 + bd
    else:
        # PyTorch only builds a downsample when stride != 1, so the identity
        # path requires matching channel counts.
        assert Cin == Cout, "stride==1 identity path requires Cin == Cout"
        wres = jnp.pad(jnp.eye(Cin, Cout, dtype=jnp.float32),
                       ((0, cin_p - Cin), (0, coutp - Cout)))
        xres = x[:, :Ho, :Wo, :]
        bias2 = b2
    wres = wres.astype(jnp.bfloat16)                     # (cin_p, coutp)
    xres = xres.reshape(N, Ho * Wo, cin_p)               # (N, m, cin_p) bf16

    # ---- conv2 (3x3, s=1, pad 1) + bn2 + residual + ReLU : one fused kernel --
    w2 = _conv3x3_weight_matrix(params["conv2_w"], s2, coutp, coutp)
    w2_total = jnp.concatenate([w2, wres], axis=0)       # (9*coutp + cin_p, coutp)
    h_img = h.reshape(N, Ho, Wo, coutp)
    # TODO(synk): fuse this 1-pixel zero border into conv1's output write.
    xs2, _ = _phase_decompose(h_img, 1)
    out = _fused_conv3x3(xs2, w2_total, jnp.pad(bias2, (0, coutp - Cout)),
                         Ho, Wo, relu=True, residual=xres,
                         out_dtype=jnp.bfloat16)         # (N, m, coutp) bf16

    out = out[:, :, :Cout].astype(jnp.float32).reshape(N, Ho, Wo, Cout)
    return jnp.transpose(out, (0, 3, 1, 2))              # back to NCHW


# --------------------------- pure-JAX reference ------------------------------ #

def _conv_ref(x, w, stride, pad):
    return lax.conv_general_dilated(
        x, w, window_strides=(stride, stride), padding=pad,
        dimension_numbers=("NCHW", "OIHW", "NCHW"))


def _bn_ref(x, bn, eps=1e-5):
    g = bn["gamma"].reshape(1, -1, 1, 1)
    b = bn["beta"].reshape(1, -1, 1, 1)
    m = bn["running_mean"].reshape(1, -1, 1, 1)
    v = bn["running_var"].reshape(1, -1, 1, 1)
    return (x - m) / jnp.sqrt(v + eps) * g + b


def resnet_block_reference(x, params, stride):
    out = _conv_ref(x, params["conv1_w"], stride, [(1, 1), (1, 1)])
    out = jnp.maximum(_bn_ref(out, params["bn1"]), 0.0)
    out = _conv_ref(out, params["conv2_w"], 1, [(1, 1), (1, 1)])
    out = _bn_ref(out, params["bn2"])
    if stride != 1:
        identity = _conv_ref(x, params["down_w"], stride, [(0, 0), (0, 0)])
        identity = _bn_ref(identity, params["bn_d"])
    else:
        identity = x
    return jnp.maximum(out + identity, 0.0)


# --------------------------------- main -------------------------------------- #

def _init_params(key, in_channels, out_channels, stride):
    ks = jax.random.split(key, 16)

    def bn_params(k):
        k1, k2, k3, k4 = jax.random.split(k, 4)
        return {
            "gamma": 0.5 + jax.random.uniform(k1, (out_channels,), jnp.float32),
            "beta": 0.1 * jax.random.normal(k2, (out_channels,), jnp.float32),
            "running_mean": 0.1 * jax.random.normal(k3, (out_channels,), jnp.float32),
            "running_var": 0.5 + jnp.abs(jax.random.normal(k4, (out_channels,), jnp.float32)),
        }

    params = {
        "conv1_w": 0.1 * jax.random.normal(ks[0], (out_channels, in_channels, 3, 3), jnp.float32),
        "bn1": bn_params(ks[1]),
        "conv2_w": 0.1 * jax.random.normal(ks[2], (out_channels, out_channels, 3, 3), jnp.float32),
        "bn2": bn_params(ks[3]),
    }
    if stride != 1:
        params["down_w"] = 0.1 * jax.random.normal(ks[4], (out_channels, in_channels, 1, 1), jnp.float32)
        params["bn_d"] = bn_params(ks[5])
    return params


if __name__ == "__main__":
    in_channels, out_channels, stride = 4, 8, 2
    N, H, W = 2, 16, 16

    key = jax.random.PRNGKey(0)
    kx, kp = jax.random.split(key)
    x = jax.random.normal(kx, (N, in_channels, H, W), jnp.float32)
    params = _init_params(kp, in_channels, out_channels, stride)

    fwd = jax.jit(functools.partial(resnet_block_forward, stride=stride))
    out = jax.block_until_ready(fwd(x, params))

    ref = resnet_block_reference(x, params, stride)
    assert out.shape == ref.shape == (N, out_channels, H // stride, W // stride)
    # bf16 matmul operands / bf16 intermediates -> compare against the f32
    # reference with a loose tolerance.
    max_err = float(jnp.max(jnp.abs(out - ref)))
    assert bool(jnp.allclose(out, ref, atol=5e-2, rtol=5e-2)), f"max abs err {max_err}"

    print("KERNEL_OK")
</pallas_src>

<mosaic_0001>
module attributes {stable_mosaic.version = 11 : i64} {
  func.func @_conv3x3_kernel(%arg0: i32, %arg1: i32, %arg2: memref<1x2x2x9x9x128xbf16, #tpu.memory_space<vmem>>, %arg3: memref<1152x128xbf16, #tpu.memory_space<vmem>>, %arg4: memref<1x128xf32, #tpu.memory_space<vmem>>, %arg5: memref<1x64x128xbf16, #tpu.memory_space<vmem>>) attributes {dimension_semantics = [#tpu.dimension_semantics<parallel>, #tpu.dimension_semantics<parallel>], iteration_bounds = array<i64: 2, 1>, scalar_prefetch = 0 : i64, scratch_operands = 0 : i64, tpu.core_type = #tpu.core_type<tc>, window_params = [{transform_indices = @transform_0, window_bounds = array<i64: 1, 2, 2, 9, 9, 128>}, {pipeline_mode = #tpu.pipeline_mode<synchronous>, transform_indices = @transform_1, window_bounds = array<i64: 1152, 128>}, {pipeline_mode = #tpu.pipeline_mode<synchronous>, transform_indices = @transform_2, window_bounds = array<i64: 1, 128>}, {transform_indices = @transform_3, window_bounds = array<i64: 1, 64, 128>}]} {
    %c0 = arith.constant 0 : index
    %c0_0 = arith.constant 0 : index
    %c0_1 = arith.constant 0 : index
    %c0_2 = arith.constant 0 : index
    %c0_3 = arith.constant 0 : index
    %c0_4 = arith.constant 0 : index
    %0 = vector.load %arg2[%c0, %c0_0, %c0_1, %c0_2, %c0_3, %c0_4] : memref<1x2x2x9x9x128xbf16, #tpu.memory_space<vmem>>, vector<1x1x1x8x8x128xbf16>
    %1 = vector.shape_cast %0 : vector<1x1x1x8x8x128xbf16> to vector<8x8x128xbf16>
    %2 = vector.shape_cast %1 : vector<8x8x128xbf16> to vector<64x128xbf16>
    %c0_5 = arith.constant 0 : index
    %c0_6 = arith.constant 0 : index
    %c1 = arith.constant 1 : index
    %c0_7 = arith.constant 0 : index
    %c0_8 = arith.constant 0 : index
    %c0_9 = arith.constant 0 : index
    %3 = vector.load %arg2[%c0_5, %c0_6, %c1, %c0_7, %c0_8, %c0_9] : memref<1x2x2x9x9x128xbf16, #tpu.memory_space<vmem>>, vector<1x1x1x8x8x128xbf16>
    %4 = vector.shape_cast %3 : vector<1x1x1x8x8x128xbf16> to vector<8x8x128xbf16>
    %5 = vector.shape_cast %4 : vector<8x8x128xbf16> to vector<64x128xbf16>
    %c0_10 = arith.constant 0 : index
    %c0_11 = arith.constant 0 : index
    %c0_12 = arith.constant 0 : index
    %c0_13 = arith.constant 0 : index
    %c1_14 = arith.constant 1 : index
    %c0_15 = arith.constant 0 : index
    %6 = vector.load %arg2[%c0_10, %c0_11, %c0_12, %c0_13, %c1_14, %c0_15] : memref<1x2x2x9x9x128xbf16, #tpu.memory_space<vmem>>, vector<1x1x1x8x8x128xbf16>
    %7 = vector.shape_cast %6 : vector<1x1x1x8x8x128xbf16> to vector<8x8x128xbf16>
    %8 = vector.shape_cast %7 : vector<8x8x128xbf16> to vector<64x128xbf16>
    %c0_16 = arith.constant 0 : index
    %c1_17 = arith.constant 1 : index
    %c0_18 = arith.constant 0 : index
    %c0_19 = arith.constant 0 : index
    %c0_20 = arith.constant 0 : index
    %c0_21 = arith.constant 0 : index
    %9 = vector.load %arg2[%c0_16, %c1_17, %c0_18, %c0_19, %c0_20, %c0_21] : memref<1x2x2x9x9x128xbf16, #tpu.memory_space<vmem>>, vector<1x1x1x8x8x128xbf16>
    %10 = vector.shape_cast %9 : vector<1x1x1x8x8x128xbf16> to vector<8x8x128xbf16>
    %11 = vector.shape_cast %10 : vector<8x8x128xbf16> to vector<64x128xbf16>
    %c0_22 = arith.constant 0 : index
    %c1_23 = arith.constant 1 : index
    %c1_24 = arith.constant 1 : index
    %c0_25 = arith.constant 0 : index
    %c0_26 = arith.constant 0 : index
    %c0_27 = arith.constant 0 : index
    %12 = vector.load %arg2[%c0_22, %c1_23, %c1_24, %c0_25, %c0_26, %c0_27] : memref<1x2x2x9x9x128xbf16, #tpu.memory_space<vmem>>, vector<1x1x1x8x8x128xbf16>
    %13 = vector.shape_cast %12 : vector<1x1x1x8x8x128xbf16> to vector<8x8x128xbf16>
    %14 = vector.shape_cast %13 : vector<8x8x128xbf16> to vector<64x128xbf16>
    %c0_28 = arith.constant 0 : index
    %c1_29 = arith.constant 1 : index
    %c0_30 = arith.constant 0 : index
    %c0_31 = arith.constant 0 : index
    %c1_32 = arith.constant 1 : index
    %c0_33 = arith.constant 0 : index
    %15 = vector.load %arg2[%c0_28, %c1_29, %c0_30, %c0_31, %c1_32, %c0_33] : memref<1x2x2x9x9x128xbf16, #tpu.memory_space<vmem>>, vector<1x1x1x8x8x128xbf16>
    %16 = vector.shape_cast %15 : vector<1x1x1x8x8x128xbf16> to vector<8x8x128xbf16>
    %17 = vector.shape_cast %16 : vector<8x8x128xbf16> to vector<64x128xbf16>
    %c0_34 = arith.constant 0 : index
    %c0_35 = arith.constant 0 : index
    %c0_36 = arith.constant 0 : index
    %c1_37 = arith.constant 1 : index
    %c0_38 = arith.constant 0 : index
    %c0_39 = arith.constant 0 : index
    %18 = vector.load %arg2[%c0_34, %c0_35, %c0_36, %c1_37, %c0_38, %c0_39] : memref<1x2x2x9x9x128xbf16, #tpu.memory_space<vmem>>, vector<1x1x1x8x8x128xbf16>
    %19 = vector.shape_cast %18 : vector<1x1x1x8x8x128xbf16> to vector<8x8x128xbf16>
    %20 = vector.shape_cast %19 : vector<8x8x128xbf16> to vector<64x128xbf16>
    %c0_40 = arith.constant 0 : index
    %c0_41 = arith.constant 0 : index
    %c1_42 = arith.constant 1 : index
    %c1_43 = arith.constant 1 : index
    %c0_44 = arith.constant 0 : index
    %c0_45 = arith.constant 0 : index
    %21 = vector.load %arg2[%c0_40, %c0_41, %c1_42, %c1_43, %c0_44, %c0_45] : memref<1x2x2x9x9x128xbf16, #tpu.memory_space<vmem>>, vector<1x1x1x8x8x128xbf16>
    %22 = vector.shape_cast %21 : vector<1x1x1x8x8x128xbf16> to vector<8x8x128xbf16>
    %23 = vector.shape_cast %22 : vector<8x8x128xbf16> to vector<64x128xbf16>
    %c0_46 = arith.constant 0 : index
    %c0_47 = arith.constant 0 : index
    %c0_48 = arith.constant 0 : index
    %c1_49 = arith.constant 1 : index
    %c1_50 = arith.constant 1 : index
    %c0_51 = arith.constant 0 : index
    %24 = vector.load %arg2[%c0_46, %c0_47, %c0_48, %c1_49, %c1_50, %c0_51] : memref<1x2x2x9x9x128xbf16, #tpu.memory_space<vmem>>, vector<1x1x1x8x8x128xbf16>
    %25 = vector.shape_cast %24 : vector<1x1x1x8x8x128xbf16> to vector<8x8x128xbf16>
    %26 = vector.shape_cast %25 : vector<8x8x128xbf16> to vector<64x128xbf16>
    %27 = tpu.concatenate %2, %5, %8, %11, %14, %17, %20, %23, %26 in 1 : vector<64x128xbf16>, vector<64x128xbf16>, vector<64x128xbf16>, vector<64x128xbf16>, vector<64x128xbf16>, vector<64x128xbf16>, vector<64x128xbf16>, vector<64x128xbf16>, vector<64x128xbf16> -> vector<64x1152xbf16>
    %c0_52 = arith.constant 0 : index
    %c0_53 = arith.constant 0 : index
    %28 = vector.load %arg3[%c0_52, %c0_53] : memref<1152x128xbf16, #tpu.memory_space<vmem>>, vector<1152x128xbf16>
    %cst = arith.constant dense<0.000000e+00> : vector<64x128xf32>
    %29 = tpu.matmul %27, %28, %cst {dimension_numbers = #tpu.dot_dimension_numbers<[1], [0], [0], [1], [0, 0, 1, 1], [], []>} : vector<64x1152xbf16>, vector<1152x128xbf16>, vector<64x128xf32> -> vector<64x128xf32>
    %c0_54 = arith.constant 0 : index
    %c0_55 = arith.constant 0 : index
    %30 = vector.load %arg4[%c0_54, %c0_55] : memref<1x128xf32, #tpu.memory_space<vmem>>, vector<1x128xf32>
    %31 = vector.broadcast %30 : vector<1x128xf32> to vector<64x128xf32>
    %32 = arith.addf %29, %31 : vector<64x128xf32>
    %cst_56 = arith.constant 0.000000e+00 : f32
    %33 = vector.broadcast %cst_56 : f32 to vector<64x128xf32>
    %34 = arith.maximumf %32, %33 : vector<64x128xf32>
    %35 = arith.truncf %34 : vector<64x128xf32> to vector<64x128xbf16>
    %c0_57 = arith.constant 0 : index
    %c0_58 = arith.constant 0 : index
    %c0_59 = arith.constant 0 : index
    %36 = vector.load %arg5[%c0_57, %c0_58, %c0_59] : memref<1x64x128xbf16, #tpu.memory_space<vmem>>, vector<1x64x128xbf16>
    %37 = vector.shape_cast %36 : vector<1x64x128xbf16> to vector<64x128xbf16>
    %38 = vector.shape_cast %35 : vector<64x128xbf16> to vector<1x64x128xbf16>
    tpu.vector_store %arg5[%c0_57, %c0_58, %c0_59], %38 {strides = array<i32>} : memref<1x64x128xbf16, #tpu.memory_space<vmem>>, vector<1x64x128xbf16>,
    return
  }
  func.func @transform_0(%arg0: i32, %arg1: i32) -> (i32, i32, i32, i32, i32, i32) {
    %c0_i32 = arith.constant 0 : i32
    %c0_i32_0 = arith.constant 0 : i32
    %c0_i32_1 = arith.constant 0 : i32
    %c0_i32_2 = arith.constant 0 : i32
    %c0_i32_3 = arith.constant 0 : i32
    %c0_i32_4 = arith.constant 0 : i32
    return %arg0, %c0_i32, %c0_i32_0, %c0_i32_1, %c0_i32_2, %c0_i32_3 : i32, i32, i32, i32, i32, i32
  }
  func.func @transform_1(%arg0: i32, %arg1: i32) -> (i32, i32) {
    %c0_i32 = arith.constant 0 : i32
    %c0_i32_0 = arith.constant 0 : i32
    %c0_i32_1 = arith.constant 0 : i32
    return %c0_i32, %c0_i32_0 : i32, i32
  }
  func.func @transform_2(%arg0: i32, %arg1: i32) -> (i32, i32) {
    %c0_i32 = arith.constant 0 : i32
    %c0_i32_0 = arith.constant 0 : i32
    %c0_i32_1 = arith.constant 0 : i32
    return %c0_i32, %c0_i32_0 : i32, i32
  }
  func.func @transform_3(%arg0: i32, %arg1: i32) -> (i32, i32, i32) {
    %c0_i32 = arith.constant 0 : i32
    %c0_i32_0 = arith.constant 0 : i32
    return %arg0, %arg1, %c0_i32 : i32, i32, i32
  }
}

module attributes {stable_mosaic.version = 11 : i64} {
  func.func @_conv3x3_kernel(%arg0: i32, %arg1: i32, %arg2: memref<1x1x1x10x10x128xbf16, #tpu.memory_space<vmem>>, %arg3: memref<1x64x128xbf16, #tpu.memory_space<vmem>>, %arg4: memref<1280x128xbf16, #tpu.memory_space<vmem>>, %arg5: memref<1x128xf32, #tpu.memory_space<vmem>>, %arg6: memref<1x64x128xbf16, #tpu.memory_space<vmem>>) attributes {dimension_semantics = [#tpu.dimension_semantics<parallel>, #tpu.dimension_semantics<parallel>], iteration_bounds = array<i64: 2, 1>, scalar_prefetch = 0 : i64, scratch_operands = 0 : i64, tpu.core_type = #tpu.core_type<tc>, window_params = [{transform_indices = @transform_0, window_bounds = array<i64: 1, 1, 1, 10, 10, 128>}, {transform_indices = @transform_1, window_bounds = array<i64: 1, 64, 128>}, {pipeline_mode = #tpu.pipeline_mode<synchronous>, transform_indices = @transform_2, window_bounds = array<i64: 1280, 128>}, {pipeline_mode = #tpu.pipeline_mode<synchronous>, transform_indices = @transform_3, window_bounds = array<i64: 1, 128>}, {transform_indices = @transform_4, window_bounds = array<i64: 1, 64, 128>}]} {
    %c0 = arith.constant 0 : index
    %c0_0 = arith.constant 0 : index
    %c0_1 = arith.constant 0 : index
    %c0_2 = arith.constant 0 : index
    %c0_3 = arith.constant 0 : index
    %c0_4 = arith.constant 0 : index
    %0 = vector.load %arg2[%c0, %c0_0, %c0_1, %c0_2, %c0_3, %c0_4] : memref<1x1x1x10x10x128xbf16, #tpu.memory_space<vmem>>, vector<1x1x1x8x8x128xbf16>
    %1 = vector.shape_cast %0 : vector<1x1x1x8x8x128xbf16> to vector<8x8x128xbf16>
    %2 = vector.shape_cast %1 : vector<8x8x128xbf16> to vector<64x128xbf16>
    %c0_5 = arith.constant 0 : index
    %c0_6 = arith.constant 0 : index
    %c0_7 = arith.constant 0 : index
    %c0_8 = arith.constant 0 : index
    %c1 = arith.constant 1 : index
    %c0_9 = arith.constant 0 : index
    %3 = vector.load %arg2[%c0_5, %c0_6, %c0_7, %c0_8, %c1, %c0_9] : memref<1x1x1x10x10x128xbf16, #tpu.memory_space<vmem>>, vector<1x1x1x8x8x128xbf16>
    %4 = vector.shape_cast %3 : vector<1x1x1x8x8x128xbf16> to vector<8x8x128xbf16>
    %5 = vector.shape_cast %4 : vector<8x8x128xbf16> to vector<64x128xbf16>
    %c0_10 = arith.constant 0 : index
    %c0_11 = arith.constant 0 : index
    %c0_12 = arith.constant 0 : index
    %c0_13 = arith.constant 0 : index
    %c2 = arith.constant 2 : index
    %c0_14 = arith.constant 0 : index
    %6 = vector.load %arg2[%c0_10, %c0_11, %c0_12, %c0_13, %c2, %c0_14] : memref<1x1x1x10x10x128xbf16, #tpu.memory_space<vmem>>, vector<1x1x1x8x8x128xbf16>
    %7 = vector.shape_cast %6 : vector<1x1x1x8x8x128xbf16> to vector<8x8x128xbf16>
    %8 = vector.shape_cast %7 : vector<8x8x128xbf16> to vector<64x128xbf16>
    %c0_15 = arith.constant 0 : index
    %c0_16 = arith.constant 0 : index
    %c0_17 = arith.constant 0 : index
    %c1_18 = arith.constant 1 : index
    %c0_19 = arith.constant 0 : index
    %c0_20 = arith.constant 0 : index
    %9 = vector.load %arg2[%c0_15, %c0_16, %c0_17, %c1_18, %c0_19, %c0_20] : memref<1x1x1x10x10x128xbf16, #tpu.memory_space<vmem>>, vector<1x1x1x8x8x128xbf16>
    %10 = vector.shape_cast %9 : vector<1x1x1x8x8x128xbf16> to vector<8x8x128xbf16>
    %11 = vector.shape_cast %10 : vector<8x8x128xbf16> to vector<64x128xbf16>
    %c0_21 = arith.constant 0 : index
    %c0_22 = arith.constant 0 : index
    %c0_23 = arith.constant 0 : index
    %c1_24 = arith.constant 1 : index
    %c1_25 = arith.constant 1 : index
    %c0_26 = arith.constant 0 : index
    %12 = vector.load %arg2[%c0_21, %c0_22, %c0_23, %c1_24, %c1_25, %c0_26] : memref<1x1x1x10x10x128xbf16, #tpu.memory_space<vmem>>, vector<1x1x1x8x8x128xbf16>
    %13 = vector.shape_cast %12 : vector<1x1x1x8x8x128xbf16> to vector<8x8x128xbf16>
    %14 = vector.shape_cast %13 : vector<8x8x128xbf16> to vector<64x128xbf16>
    %c0_27 = arith.constant 0 : index
    %c0_28 = arith.constant 0 : index
    %c0_29 = arith.constant 0 : index
    %c1_30 = arith.constant 1 : index
    %c2_31 = arith.constant 2 : index
    %c0_32 = arith.constant 0 : index
    %15 = vector.load %arg2[%c0_27, %c0_28, %c0_29, %c1_30, %c2_31, %c0_32] : memref<1x1x1x10x10x128xbf16, #tpu.memory_space<vmem>>, vector<1x1x1x8x8x128xbf16>
    %16 = vector.shape_cast %15 : vector<1x1x1x8x8x128xbf16> to vector<8x8x128xbf16>
    %17 = vector.shape_cast %16 : vector<8x8x128xbf16> to vector<64x128xbf16>
    %c0_33 = arith.constant 0 : index
    %c0_34 = arith.constant 0 : index
    %c0_35 = arith.constant 0 : index
    %c2_36 = arith.constant 2 : index
    %c0_37 = arith.constant 0 : index
    %c0_38 = arith.constant 0 : index
    %18 = vector.load %arg2[%c0_33, %c0_34, %c0_35, %c2_36, %c0_37, %c0_38] : memref<1x1x1x10x10x128xbf16, #tpu.memory_space<vmem>>, vector<1x1x1x8x8x128xbf16>
    %19 = vector.shape_cast %18 : vector<1x1x1x8x8x128xbf16> to vector<8x8x128xbf16>
    %20 = vector.shape_cast %19 : vector<8x8x128xbf16> to vector<64x128xbf16>
    %c0_39 = arith.constant 0 : index
    %c0_40 = arith.constant 0 : index
    %c0_41 = arith.constant 0 : index
    %c2_42 = arith.constant 2 : index
    %c1_43 = arith.constant 1 : index
    %c0_44 = arith.constant 0 : index
    %21 = vector.load %arg2[%c0_39, %c0_40, %c0_41, %c2_42, %c1_43, %c0_44] : memref<1x1x1x10x10x128xbf16, #tpu.memory_space<vmem>>, vector<1x1x1x8x8x128xbf16>
    %22 = vector.shape_cast %21 : vector<1x1x1x8x8x128xbf16> to vector<8x8x128xbf16>
    %23 = vector.shape_cast %22 : vector<8x8x128xbf16> to vector<64x128xbf16>
    %c0_45 = arith.constant 0 : index
    %c0_46 = arith.constant 0 : index
    %c0_47 = arith.constant 0 : index
    %c2_48 = arith.constant 2 : index
    %c2_49 = arith.constant 2 : index
    %c0_50 = arith.constant 0 : index
    %24 = vector.load %arg2[%c0_45, %c0_46, %c0_47, %c2_48, %c2_49, %c0_50] : memref<1x1x1x10x10x128xbf16, #tpu.memory_space<vmem>>, vector<1x1x1x8x8x128xbf16>
    %25 = vector.shape_cast %24 : vector<1x1x1x8x8x128xbf16> to vector<8x8x128xbf16>
    %26 = vector.shape_cast %25 : vector<8x8x128xbf16> to vector<64x128xbf16>
    %c0_51 = arith.constant 0 : index
    %c0_52 = arith.constant 0 : index
    %c0_53 = arith.constant 0 : index
    %27 = vector.load %arg3[%c0_51, %c0_52, %c0_53] : memref<1x64x128xbf16, #tpu.memory_space<vmem>>, vector<1x64x128xbf16>
    %28 = vector.shape_cast %27 : vector<1x64x128xbf16> to vector<64x128xbf16>
    %29 = tpu.concatenate %2, %5, %8, %11, %14, %17, %20, %23, %26, %28 in 1 : vector<64x128xbf16>, vector<64x128xbf16>, vector<64x128xbf16>, vector<64x128xbf16>, vector<64x128xbf16>, vector<64x128xbf16>, vector<64x128xbf16>, vector<64x128xbf16>, vector<64x128xbf16>, vector<64x128xbf16> -> vector<64x1280xbf16>
    %c0_54 = arith.constant 0 : index
    %c0_55 = arith.constant 0 : index
    %30 = vector.load %arg4[%c0_54, %c0_55] : memref<1280x128xbf16, #tpu.memory_space<vmem>>, vector<1280x128xbf16>
    %cst = arith.constant dense<0.000000e+00> : vector<64x128xf32>
    %31 = tpu.matmul %29, %30, %cst {dimension_numbers = #tpu.dot_dimension_numbers<[1], [0], [0], [1], [0, 0, 1, 1], [], []>} : vector<64x1280xbf16>, vector<1280x128xbf16>, vector<64x128xf32> -> vector<64x128xf32>
    %c0_56 = arith.constant 0 : index
    %c0_57 = arith.constant 0 : index
    %32 = vector.load %arg5[%c0_56, %c0_57] : memref<1x128xf32, #tpu.memory_space<vmem>>, vector<1x128xf32>
    %33 = vector.broadcast %32 : vector<1x128xf32> to vector<64x128xf32>
    %34 = arith.addf %31, %33 : vector<64x128xf32>
    %cst_58 = arith.constant 0.000000e+00 : f32
    %35 = vector.broadcast %cst_58 : f32 to vector<64x128xf32>
    %36 = arith.maximumf %34, %35 : vector<64x128xf32>
    %37 = arith.truncf %36 : vector<64x128xf32> to vector<64x128xbf16>
    %c0_59 = arith.constant 0 : index
    %c0_60 = arith.constant 0 : index
    %c0_61 = arith.constant 0 : index
    %38 = vector.load %arg6[%c0_59, %c0_60, %c0_61] : memref<1x64x128xbf16, #tpu.memory_space<vmem>>, vector<1x64x128xbf16>
    %39 = vector.shape_cast %38 : vector<1x64x128xbf16> to vector<64x128xbf16>
    %40 = vector.shape_cast %37 : vector<64x128xbf16> to vector<1x64x128xbf16>
    tpu.vector_store %arg6[%c0_59, %c0_60, %c0_61], %40 {strides = array<i32>} : memref<1x64x128xbf16, #tpu.memory_space<vmem>>, vector<1x64x128xbf16>,
    return
  }
  func.func @transform_0(%arg0: i32, %arg1: i32) -> (i32, i32, i32, i32, i32, i32) {
    %c0_i32 = arith.constant 0 : i32
    %c0_i32_0 = arith.constant 0 : i32
    %c0_i32_1 = arith.constant 0 : i32
    %c0_i32_2 = arith.constant 0 : i32
    %c0_i32_3 = arith.constant 0 : i32
    %c0_i32_4 = arith.constant 0 : i32
    return %arg0, %c0_i32, %c0_i32_0, %c0_i32_1, %c0_i32_2, %c0_i32_3 : i32, i32, i32, i32, i32, i32
  }
  func.func @transform_1(%arg0: i32, %arg1: i32) -> (i32, i32, i32) {
    %c0_i32 = arith.constant 0 : i32
    %c0_i32_0 = arith.constant 0 : i32
    return %arg0, %arg1, %c0_i32 : i32, i32, i32
  }
  func.func @transform_2(%arg0: i32, %arg1: i32) -> (i32, i32) {
    %c0_i32 = arith.constant 0 : i32
    %c0_i32_0 = arith.constant 0 : i32
    %c0_i32_1 = arith.constant 0 : i32
    return %c0_i32, %c0_i32_0 : i32, i32
  }
  func.func @transform_3(%arg0: i32, %arg1: i32) -> (i32, i32) {
    %c0_i32 = arith.constant 0 : i32
    %c0_i32_0 = arith.constant 0 : i32
    %c0_i32_1 = arith.constant 0 : i32
    return %c0_i32, %c0_i32_0 : i32, i32
  }
  func.func @transform_4(%arg0: i32, %arg1: i32) -> (i32, i32, i32) {
    %c0_i32 = arith.constant 0 : i32
    %c0_i32_0 = arith.constant 0 : i32
    return %arg0, %arg1, %c0_i32 : i32, i32, i32
  }
}

</mosaic_0001>

<bundles_post_ra>
// kernel: resnet_block_forward.2
= control target key start
LH: loop header
LB: loop body
LE: loop exit
PB: predicated region body
PF: predicated region fallthrough
CT: control target
= control target key end

     0   :  { %s2432_s12 = smov 0   ;;  %s2434_s13 = smov 0   ;;  %s2881_s0 = inlined_call_operand.vmem [shape: bf16[2,2,2,9,9,128], index: 0, kind: input, shape index: {}]   ;;  %s2882_s1 = inlined_call_operand.vmem [shape: bf16[1152,128], index: 1, kind: input, shape index: {}]   ;;  %s2883_s2 = inlined_call_operand.vmem [shape: f32[1,128], index: 2, kind: input, shape index: {}]   ;;  %s2884_s3 = inlined_call_operand.vmem [shape: bf16[2,64,128], index: 3, kind: output, shape index: {}]  }
   0x1   :  { %s2436_s14 = smov 0  }
   0x2 LB: > { %s25_s15 = sadd.s32 1, %s2406_s13  ;;  %p1844_p0 = scmp.ge.s32.totalorder %s2410_s14, 1  ;;  %s2410_s14 = sphi %s2436_s14, %s13_s14   ;;  %s2406_s13 = sphi %s2434_s13, %s2888_s13   ;;  %s2402_s12 = sphi %s2432_s12, %s2887_s12  }
   0x3   : > { %p27_p1 = scmp.ge.s32.totalorder %s25_s15, 2  ;;  %p151_p2 = scmp.lt.s32.totalorder %s2410_s14, 3 }
   0x5   : > { %s2890_s15 = smov (%p27_p1, %s25_s15), 0  ;;  %p152_p3 = pnand %p1844_p0, %p151_p2 }
   0x6   : > { %v2292_v0 = vld [vmem:[%s2882_s1 + $0x40] sm:$0xff] (!%p152_p3)   ;;  %v2296_v4 = vld [vmem:[%s2882_s1 + $0x48] sm:$0xff] (!%p152_p3)   ;;  %v2300_v8 = vld [vmem:[%s2882_s1 + $0x50] sm:$0xff] (!%p152_p3)   ;;  %p179_p4 = scmp.lt.s32.totalorder (!%p152_p3), %s2402_s12, 1  ;;  %vm220_vm0 = vsmask.f32 (!%p152_p3), 3328 }
   0x7   : > { %155 = sbr.rel (%p152_p3) target bundleno = 329 (0x149), region = 32  ;;  %v2293_v1 = vld [vmem:[%s2882_s1 + $0xc0] sm:$0xff] (!%p152_p3)   ;;  %2055 = vmatprep.subr.bf16.mxu0 (!%p152_p3), %v2292_v0  ;;  %v2297_v5 = vld [vmem:[%s2882_s1 + $0xc8] sm:$0xff] (!%p152_p3)   ;;  %v2301_v9 = vld [vmem:[%s2882_s1 + $0xd0] sm:$0xff] (!%p152_p3)   ;;  %vm221_vm1 = vsmask.f32 (!%p152_p3), 7440 }
   0x8   : > { %v2294_v2 = vld [vmem:[%s2882_s1] sm:$0xff] (!%p152_p3)   ;;  %2095 = vmatprep.subr.bf16.mxu1 (!%p152_p3), %v2293_v1  ;;  %v2298_v6 = vld [vmem:[%s2882_s1 + $0x8] sm:$0xff] (!%p152_p3)   ;;  %v2302_v10 = vld [vmem:[%s2882_s1 + $0x10] sm:$0xff] (!%p152_p3)  }
   0x9   : > { %v2295_v3 = vld [vmem:[%s2882_s1 + $0x80] sm:$0xff] (!%p152_p3)   ;;  %2056 = vmatpush3.bf16.msra.mxu0 (!%p152_p3), %v2294_v2  ;;  %v2299_v7 = vld [vmem:[%s2882_s1 + $0x88] sm:$0xff] (!%p152_p3)   ;;  %v2303_v11 = vld [vmem:[%s2882_s1 + $0x90] sm:$0xff] (!%p152_p3)  }
   0xa   : > { %2096 = vmatpush3.bf16.msra.mxu1 (!%p152_p3), %v2295_v3  ;;  %2057 = vmatprep.subr.bf16.mxu0 (!%p152_p3), %v2296_v4  ;;  %v2304_v12 = vld [vmem:[%s2882_s1 + $0x58] sm:$0xff] (!%p152_p3)   ;;  %v2308_v16 = vld [vmem:[%s2882_s1 + $0x60] sm:$0xff] (!%p152_p3)   ;;  %v2312_v20 = vld [vmem:[%s2882_s1 + $0x68] sm:$0xff] (!%p152_p3)  }
   0xb   : > { %2097 = vmatprep.subr.bf16.mxu1 (!%p152_p3), %v2297_v5  ;;  %v2305_v13 = vld [vmem:[%s2882_s1 + $0xd8] sm:$0xff] (!%p152_p3)   ;;  %v2309_v17 = vld [vmem:[%s2882_s1 + $0xe0] sm:$0xff] (!%p152_p3)   ;;  %v2313_v21 = vld [vmem:[%s2882_s1 + $0xe8] sm:$0xff] (!%p152_p3)  }
   0xc   : > { %v2306_v14 = vld [vmem:[%s2882_s1 + $0x18] sm:$0xff] (!%p152_p3)   ;;  %v2310_v18 = vld [vmem:[%s2882_s1 + $0x20] sm:$0xff] (!%p152_p3)   ;;  %v2314_v22 = vld [vmem:[%s2882_s1 + $0x28] sm:$0xff] (!%p152_p3)  }
   0xd   : > { %2058 = vmatpush3.bf16.msra.mxu0 (!%p152_p3), %v2298_v6  ;;  %v2307_v15 = vld [vmem:[%s2882_s1 + $0x98] sm:$0xff] (!%p152_p3)   ;;  %v2311_v19 = vld [vmem:[%s2882_s1 + $0xa0] sm:$0xff] (!%p152_p3)   ;;  %v2315_v23 = vld [vmem:[%s2882_s1 + $0xa8] sm:$0xff] (!%p152_p3)  }
   0xe   : > { %2098 = vmatpush3.bf16.msra.mxu1 %v2299_v7  ;;  %2059 = vmatprep.subr.bf16.mxu0 %v2300_v8  ;;  %s2892_s12 = smov (!%p179_p4, %s2402_s12), 1  ;;  %v2316_v24 = vld [vmem:[%s2882_s1 + $0x70] sm:$0xff]   ;;  %v2320_v28 = vld [vmem:[%s2882_s1 + $0x78] sm:$0xff]   ;;  %v2327_v41 = vld [vmem:[%s2882_s1 + $0x140] sm:$0xff]  }
   0xf   : > { %2099 = vmatprep.subr.bf16.mxu1 %v2301_v9  ;;  %v2317_v25 = vld [vmem:[%s2882_s1 + $0xf0] sm:$0xff]   ;;  %s2267_s24 = smul.u32 288, %s2892_s12  ;;  %v2321_v29 = vld [vmem:[%s2882_s1 + $0xf8] sm:$0xff]   ;;  %vm2571_vm2 = vmor %vm220_vm0, %vm221_vm1  ;;  %s2023_s30 = sshll.u32 %s2892_s12, 5 }
  0x10   : > { %v2318_v26 = vld [vmem:[%s2882_s1 + $0x30] sm:$0xff]   ;;  %v2322_v30 = vld [vmem:[%s2882_s1 + $0x38] sm:$0xff]   ;;  %v2328_v57 = vld [vmem:[%s2882_s1 + $0x1c0] sm:$0xff]   ;;  %s192_s6 = scalar_lea.vmem %s2884_s3, %s2023_s30 }
  0x11   : > { %2060 = vmatpush3.bf16.msra.mxu0 %v2302_v10  ;;  %v2319_v27 = vld [vmem:[%s2882_s1 + $0xb0] sm:$0xff]   ;;  %s2553_s8 = scalar_lea.vmem %s2881_s0, %s2267_s24  ;;  %v2323_v31 = vld [vmem:[%s2882_s1 + $0xb8] sm:$0xff]   ;;  %v2329_v62 = vld [vmem:[%s2882_s1 + $0x100] sm:$0xff]  }
  0x12   : > { %2100 = vmatpush3.bf16.msra.mxu1 %v2303_v11  ;;  %2061 = vmatprep.subr.bf16.mxu0 %v2304_v12  ;;  %v2324_v32 = vld [vmem:[%s2553_s8 + $0x48] ss:$8 sps:$4 sm:$0xff]   ;;  %v2561_v34 = vld [vmem:[%s2553_s8 + $0x98] sm:$0xf]  ;;  %v195_v35 = vld [vmem:[%s2553_s8] sm:$0xf] }
  0x13   : > { %2101 = vmatprep.subr.bf16.mxu1 %v2305_v13  ;;  %v1856_v33 = vld [vmem:[%s2553_s8 + $0x90] sm:$0xf]  ;;  %1418 = vmatprep.mubr.bf16.mxu0 %v2324_v32  ;;  %v196_v36 = vld [vmem:[%s2553_s8 + $0x8] sm:$0xf]  ;;  %v224_v38 = vshrl.u32 %v195_v35, 16  ;;  %v227_v39 = vshll.u32 %v195_v35, 16 }
  0x14   : > { %v1916_v37 = vcombine.low %v1856_v33, %v2561_v34  ;;  %v238_v40 = vshrl.u32 %v196_v36, 16  ;;  %v362_v42 = vshrl.u32 %v1856_v33, 16  ;;  %v365_v43 = vshll.u32 %v1856_v33, 16  ;;  %v212_v44 = vld [vmem:[%s2553_s8 + $0x4] sm:$0x1]  ;;  %v2331_v0 = vld [vmem:[%s2882_s1 + $0x148] sm:$0xff]  }
  0x15   : > { %2062 = vmatpush3.bf16.msra.mxu0 %v2306_v14  ;;  %v213_v45 = vld [vmem:[%s2553_s8 + $0xc] sm:$0x1]  ;;  %v226_v46 = vrot.slane %v224_v38, 4  ;;  %v229_v47 = vrot.slane %v227_v39, 5  ;;  %v241_v49 = vshll.u32 %v196_v36, 16  ;;  %v1904_v50 = vcombine.low %v195_v35, %v196_v36  ;;  %v2330_v3 = vld [vmem:[%s2882_s1 + $0x180] sm:$0xff]  }
  0x16   : > { %2102 = vmatpush3.bf16.msra.mxu1 %v2307_v15  ;;  %2063 = vmatprep.subr.bf16.mxu0 %v2308_v16  ;;  %v240_v48 = vrot.slane %v238_v40, 4  ;;  %v233_v53 = vshll.u32 %v212_v44, 16  ;;  %v364_v54 = vrot.slane %v362_v42, 4  ;;  %v247_v56 = vshll.u32 %v213_v45, 16  ;;  %v2333_v6 = vld [vmem:[%s2882_s1 + $0x108] sm:$0xff]   ;;  %v2339_v35 = vld [vmem:[%s2882_s1 + $0x1d0] sm:$0xff]  }
  0x17   : > { %2103 = vmatprep.subr.bf16.mxu1 %v2309_v17  ;;  %1483 = vmatprep.mubr.bf16.mxu1 %v1916_v37  ;;  %v243_v51 = vrot.slane %v241_v49, 5  ;;  %v230_v52 = vor.u32 %v229_v47, %v226_v46  ;;  %v367_v58 = vrot.slane %v365_v43, 5  ;;  %v376_v4 = vshrl.u32 %v2561_v34, 16  ;;  %v2332_v10 = vld [vmem:[%s2882_s1 + $0x1c8] sm:$0xff]   ;;  %v2335_v11 = vld [vmem:[%s2553_s8 + $0x58] ss:$8 sps:$4 sm:$0xff]  }
  0x18   : > { %v235_v60 = vrot.slane %v233_v53, 5  ;;  %v249_v63 = vrot.slane %v247_v56, 5  ;;  %v379_v8 = vshll.u32 %v2561_v34, 16  ;;  %v1858_v12 = vld [vmem:[%s2553_s8 + $0xa0] sm:$0xf]  ;;  %v2334_v16 = vld [vmem:[%s2882_s1 + $0x188] sm:$0xff]  }
  0x19   : > { %2064 = vmatpush3.bf16.msra.mxu0 %v2310_v18  ;;  %v231_v59 = vrot.slane %v230_v52, 4  ;;  %v244_v61 = vor.u32 %v243_v51, %v240_v48  ;;  %v368_v7 = vor.u32 %v367_v58, %v364_v54  ;;  %v2602_v13 = vld [vmem:[%s2553_s8 + $0xa8] sm:$0xf]  ;;  %v197_v14 = vld [vmem:[%s2553_s8 + $0x10] sm:$0xf]  ;;  %v2605_v15 = vrot.slane %v376_v4, 4 }
  0x1a   : > { %2104 = vmatpush3.bf16.msra.mxu1 %v2311_v19  ;;  %2065 = vmatprep.subr.bf16.mxu0 %v2312_v20  ;;  %v1917_v17 = vcombine.low %v1858_v12, %v2602_v13  ;;  %v198_v18 = vld [vmem:[%s2553_s8 + $0x18] sm:$0xf]  ;;  %v252_v19 = vshrl.u32 %v197_v14, 16  ;;  %v2338_v20 = vld [vmem:[%s2882_s1 + $0x150] sm:$0xff]   ;;  %v404_v49 = vshrl.u32 %v2602_v13, 16  ;;  %v407_v52 = vshll.u32 %v2602_v13, 16 }
  0x1b   : > { %2105 = vmatprep.subr.bf16.mxu1 %v2313_v21  ;;  %v236_v1 = vsel %vm2571_vm2, %v231_v59, %v235_v60  ;;  %v245_v2 = vrot.slane %v244_v61, 4  ;;  %v2615_v21 = vrot.slane %v368_v7, 4  ;;  %v1905_v33 = vcombine.low %v197_v14, %v198_v18  ;;  %v2340_v40 = vld [vmem:[%s2882_s1 + $0x110] sm:$0xff]   ;;  %v2342_v45 = vld [vmem:[%s2882_s1 + $0x158] sm:$0xff]   ;;  %v216_v4 = vld [vmem:[%s2553_s8 + $0x24] sm:$0x1] }
  0x1c   : > { %v2341_v43 = vld [vmem:[%s2882_s1 + $0x190] sm:$0xff]   ;;  %v2343_v47 = vld [vmem:[%s2882_s1 + $0x1d8] sm:$0xff]  }
  0x1d   : > { %2066 = vmatpush3.bf16.msra.mxu0 %v2314_v22  ;;  %v250_v5 = vsel %vm2571_vm2, %v245_v2, %v249_v63  ;;  %v2617_v22 = vrot.slane %v379_v8, 5  ;;  %v2344_v51 = vld [vmem:[%s2882_s1 + $0x118] sm:$0xff]   ;;  %v2346_v56 = vld [vmem:[%s2553_s8 + $0x68] ss:$8 sps:$4 sm:$0xff]   ;;  %v199_v63 = vld [vmem:[%s2553_s8 + $0x20] sm:$0xf] }
  0x1e   : > { %2106 = vmatpush3.bf16.msra.mxu1 %v2315_v23  ;;  %2067 = vmatprep.subr.bf16.mxu0 %v2316_v24  ;;  %v1912_v9 = vcombine.low %v236_v1, %v250_v5  ;;  %v255_v23 = vshll.u32 %v197_v14, 16  ;;  %v266_v24 = vshrl.u32 %v198_v18, 16  ;;  %v2345_v54 = vld [vmem:[%s2882_s1 + $0x198] sm:$0xff]   ;;  %v200_v1 = vld [vmem:[%s2553_s8 + $0x28] sm:$0xf]  ;;  %v280_v2 = vshrl.u32 %v199_v63, 16 }
  0x1f   : > { %2107 = vmatprep.subr.bf16.mxu1 %v2317_v25  ;;  %v214_v25 = vld [vmem:[%s2553_s8 + $0x14] sm:$0x1]  ;;  %v2651_v58 = vld [vmem:[%s2553_s8 + $0xb8] sm:$0xf]  ;;  %v406_v5 = vrot.slane %v404_v49, 4  ;;  %v297_v13 = vshll.u32 %v200_v1, 16  ;;  %v1906_v14 = vcombine.low %v199_v63, %v200_v1 }
  0x20   : > { %v268_v32 = vrot.slane %v266_v24, 4  ;;  %v261_v34 = vshll.u32 %v214_v25, 16 }
  0x21   : > { %2068 = vmatpush3.bf16.msra.mxu0 %v2318_v26  ;;  %v390_v26 = vshrl.u32 %v1858_v12, 16 }
  0x22   : > { %2108 = vmatpush3.bf16.msra.mxu1 %v2319_v27  ;;  %2069 = vmatprep.subr.bf16.mxu0 %v2320_v28  ;;  %v393_v27 = vshll.u32 %v1858_v12, 16  ;;  %v254_v28 = vrot.slane %v252_v19, 4  ;;  %v263_v39 = vrot.slane %v261_v34, 5  ;;  %v294_v12 = vshrl.u32 %v200_v1, 16  ;;  %v2350_v19 = vld [vmem:[%s2882_s1 + $0x1e0] sm:$0xff]  }
  0x23   : > { %2109 = vmatprep.subr.bf16.mxu1 %v2321_v29  ;;  %v269_v29 = vshll.u32 %v198_v18, 16  ;;  %v392_v59 = vrot.slane %v390_v26, 4  ;;  %v2349_v18 = vld [vmem:[%s2882_s1 + $0x160] sm:$0xff]  }
  0x24   : > { %v395_v60 = vrot.slane %v393_v27, 5  ;;  %v382_v27 = vor.u32 %v2617_v22, %v2605_v15  ;;  %v2353_v15 = vld [vmem:[%s2882_s1 + $0x168] sm:$0xff]   ;;  %v435_v22 = vshll.u32 %v2651_v58, 16 }
  0x25   : > { %2070 = vmatpush3.bf16.msra.mxu0 %v2322_v30  ;;  %v215_v30 = vld [vmem:[%s2553_s8 + $0x1c] sm:$0x1]  ;;  %v271_v36 = vrot.slane %v269_v29, 5 }
  0x26   : > { %2110 = vmatpush3.bf16.msra.mxu1 %v2323_v31  ;;  %2135 = vmatprep.subr.bf16.mxu0 %v2327_v41  ;;  %v257_v31 = vrot.slane %v255_v23, 5  ;;  %v275_v37 = vshll.u32 %v215_v30, 16  ;;  %v299_v23 = vrot.slane %v297_v13, 5  ;;  %v2351_v30 = vld [vmem:[%s2882_s1 + $0x120] sm:$0xff]   ;;  %v2699_v49 = vrot.slane %v435_v22, 5 }
  0x27   : > { %2175 = vmatprep.subr.bf16.mxu1 %v2328_v57  ;;  %v272_v41 = vor.u32 %v271_v36, %v268_v32  ;;  %v1860_v57 = vld [vmem:[%s2553_s8 + $0xb0] sm:$0xf]  ;;  %v2352_v32 = vld [vmem:[%s2882_s1 + $0x1a0] sm:$0xff]   ;;  %v2354_v36 = vld [vmem:[%s2882_s1 + $0x1e8] sm:$0xff]  }
  0x28   : > { %1419 = vmatmul.mubr.bf16.vlgmr.msra.gmra.mrb[0].mxu0 %v1904_v50  ;;  %v258_v38 = vor.u32 %v257_v31, %v254_v28  ;;  %v277_v42 = vrot.slane %v275_v37, 5  ;;  %v418_v61 = vshrl.u32 %v1860_v57, 16  ;;  %v432_v31 = vshrl.u32 %v2651_v58, 16  ;;  %v2368_v22 = vld [vmem:[%s2553_s8 + $0x50] ss:$8 sps:$4 sm:$0xff]  }
  0x29   : > { %2136 = vmatpush3.bf16.msra.mxu0 %v2329_v62  ;;  %1484 = vmatmul.mubr.bf16.vlgmr.msra.gmra.mrb[0].mxu1 %v1912_v9  ;;  %v273_v46 = vrot.slane %v272_v41, 4  ;;  %v421_v62 = vshll.u32 %v1860_v57, 16  ;;  %v217_v9 = vld [vmem:[%s2553_s8 + $0x2c] sm:$0x1] }
  0x2a   : > { %2137 = vmatprep.subr.bf16.mxu0 %v2331_v0  ;;  %2176 = vmatpush3.bf16.msra.mxu1 %v2330_v3  ;;  %v259_v44 = vrot.slane %v258_v38, 4  ;;  %v1918_v0 = vcombine.low %v1860_v57, %v2651_v58  ;;  %v283_v3 = vshll.u32 %v199_v63, 16  ;;  %v420_v7 = vrot.slane %v418_v61, 4  ;;  %v2355_v41 = vld [vmem:[%s2882_s1 + $0x128] sm:$0xff]   ;;  %v218_v58 = vld [vmem:[%s2553_s8 + $0x34] sm:$0x1] }
  0x2b   : > { %1426 = vmatprep.mubr.bf16.mxu0 %v2335_v11  ;;  %2177 = vmatprep.subr.bf16.mxu1 %v2332_v10  ;;  %v278_v50 = vsel %vm2571_vm2, %v273_v46, %v277_v42  ;;  %v423_v8 = vrot.slane %v421_v62, 5  ;;  %v282_v10 = vrot.slane %v280_v2, 4  ;;  %v1862_v46 = vld [vmem:[%s2553_s8 + $0xc0] sm:$0xf]  ;;  %v219_v63 = vld [vmem:[%s2553_s8 + $0x3c] sm:$0x1] }
  0x2c   : > { %1491 = vmatprep.mubr.bf16.mxu1 %v1917_v17  ;;  %v264_v48 = vsel %vm2571_vm2, %v259_v44, %v263_v39  ;;  %v285_v11 = vrot.slane %v283_v3, 5  ;;  %v303_v17 = vshll.u32 %v217_v9, 16  ;;  %v2682_v39 = vrot.slane %v382_v27, 4 }
  0x2d   : > { %2138 = vmatpush3.bf16.msra.mxu0 %v2333_v6  ;;  %v1913_v53 = vcombine.low %v264_v48, %v278_v50  ;;  %v409_v6 = vrot.slane %v407_v52, 5  ;;  %v424_v38 = vor.u32 %v423_v8, %v420_v7  ;;  %v2697_v48 = vrot.slane %v432_v31, 4  ;;  %v201_v50 = vld [vmem:[%s2553_s8 + $0x30] sm:$0xf] }
  0x2e   : > { %2139 = vmatprep.subr.bf16.mxu0 %v2338_v20  ;;  %2178 = vmatpush3.bf16.msra.mxu1 %v2334_v16  ;;  %v289_v16 = vshll.u32 %v216_v4, 16  ;;  %v296_v20 = vrot.slane %v294_v12, 4  ;;  %v286_v24 = vor.u32 %v285_v11, %v282_v10  ;;  %v305_v26 = vrot.slane %v303_v17, 5  ;;  %v2360_v7 = vld [vmem:[%s2882_s1 + $0x170] sm:$0xff]  }
  0x2f   : > { %2179 = vmatprep.subr.bf16.mxu1 %v2339_v35  ;;  %v410_v37 = vor.u32 %v409_v6, %v406_v5  ;;  %v2704_v52 = vrot.slane %v424_v38, 4  ;;  %v311_v57 = vshll.u32 %v201_v50, 16  ;;  %v317_v5 = vshll.u32 %v218_v58, 16  ;;  %v2361_v8 = vld [vmem:[%s2882_s1 + $0x1f0] sm:$0xff]   ;;  %v2373_v58 = vld [vmem:[%s2553_s8 + $0x60] ss:$8 sps:$4 sm:$0xff]  }
  0x30   : > { %1427 = vmatmul.mubr.bf16.gmra.mrb[4].mxu0 %v1905_v33  ;;  %v291_v25 = vrot.slane %v289_v16, 5  ;;  %v287_v28 = vrot.slane %v286_v24, 4  ;;  %v300_v29 = vor.u32 %v299_v23, %v296_v20  ;;  %v396_v33 = vor.u32 %v395_v60, %v392_v59  ;;  %v2362_v17 = vld [vmem:[%s2882_s1 + $0x130] sm:$0xff]   ;;  %v2364_v24 = vld [vmem:[%s2882_s1 + $0x178] sm:$0xff]  }
  0x31   : > { %2140 = vmatpush3.bf16.msra.mxu0 %v2340_v40  ;;  %1492 = vmatmul.mubr.bf16.gmra.mrb[4].mxu1 %v1913_v53  ;;  %v446_v59 = vshrl.u32 %v1862_v46, 16  ;;  %v449_v60 = vshll.u32 %v1862_v46, 16  ;;  %v313_v1 = vrot.slane %v311_v57, 5  ;;  %v331_v6 = vshll.u32 %v219_v63, 16 }
  0x32   : > { %2180 = vmatpush3.bf16.msra.mxu1 %v2341_v43  ;;  %2141 = vmatprep.subr.bf16.mxu0 %v2342_v45  ;;  %v292_v34 = vsel %vm2571_vm2, %v287_v28, %v291_v25  ;;  %v301_v35 = vrot.slane %v300_v29, 4  ;;  %v2356_v43 = vld [vmem:[%s2882_s1 + $0x1a8] sm:$0xff]   ;;  %v2692_v44 = vrot.slane %v396_v33, 4  ;;  %v2357_v45 = vld [vmem:[%s2553_s8 + $0x78] ss:$8 sps:$4 sm:$0xff]   ;;  %v319_v12 = vrot.slane %v317_v5, 5 }
  0x33   : > { %2181 = vmatprep.subr.bf16.mxu1 %v2343_v47  ;;  %1434 = vmatprep.mubr.bf16.mxu0 %v2346_v56  ;;  %v1863_v47 = vld [vmem:[%s2553_s8 + $0xc8] sm:$0xf]  ;;  %v308_v56 = vshrl.u32 %v201_v50, 16  ;;  %v333_v13 = vrot.slane %v331_v6, 5  ;;  %v451_v25 = vrot.slane %v449_v60, 5  ;;  %v2366_v29 = vld [vmem:[%s2882_s1 + $0x138] sm:$0xff]  }
  0x34   : > { %1499 = vmatprep.mubr.bf16.mxu1 %v1918_v0  ;;  %v306_v40 = vsel %vm2571_vm2, %v301_v35, %v305_v26  ;;  %v1919_v53 = vcombine.low %v1862_v46, %v1863_v47  ;;  %v460_v61 = vshrl.u32 %v1863_v47, 16  ;;  %v463_v62 = vshll.u32 %v1863_v47, 16  ;;  %v2365_v26 = vld [vmem:[%s2882_s1 + $0x1f8] sm:$0xff]   ;;  %v1872_v33 = vld [vmem:[%s2553_s8 + $0x94] sm:$0x1]  ;;  %v2371_v46 = vld [vmem:[%s2882_s1 + $0x200] sm:$0xff]  }
  0x35   : > { %2142 = vmatpush3.bf16.msra.mxu0 %v2344_v51  ;;  %v1914_v42 = vcombine.low %v292_v34, %v306_v40  ;;  %v2702_v51 = vrot.slane %v410_v37, 4  ;;  %v310_v0 = vrot.slane %v308_v56, 4  ;;  %v1873_v34 = vld [vmem:[%s2553_s8 + $0x9c] sm:$0x1]  ;;  %v371_v35 = vshll.u32 %v1872_v33, 16 }
  0x36   : > { %2182 = vmatpush3.bf16.msra.mxu1 %v2345_v54  ;;  %2143 = vmatprep.subr.bf16.mxu0 %v2349_v18  ;;  %v202_v54 = vld [vmem:[%s2553_s8 + $0x38] sm:$0xf]  ;;  %v448_v18 = vrot.slane %v446_v59, 4  ;;  %v462_v27 = vrot.slane %v460_v61, 4  ;;  %v2374_v5 = vld [vmem:[%s2553_s8 + $0xe8] ss:$8 sps:$4 sm:$0xff]  }
  0x37   : > { %2183 = vmatprep.subr.bf16.mxu1 %v2350_v19  ;;  %v322_v2 = vshrl.u32 %v202_v54, 16  ;;  %v325_v3 = vshll.u32 %v202_v54, 16  ;;  %v1907_v4 = vcombine.low %v201_v50, %v202_v54  ;;  %v314_v11 = vor.u32 %v313_v1, %v310_v0  ;;  %v2363_v19 = vld [vmem:[%s2882_s1 + $0x1b0] sm:$0xff]   ;;  %v2369_v40 = vld [vmem:[%s2553_s8 + $0xd8] ss:$8 sps:$4 sm:$0xff]  }
  0x38   : > { %1435 = vmatmul.mubr.bf16.gmra.mrb[8].mxu0 %v1906_v14  ;;  %v373_v37 = vrot.slane %v371_v35, 5  ;;  %v452_v47 = vor.u32 %v451_v25, %v448_v18  ;;  %v1875_v54 = vld [vmem:[%s2553_s8 + $0xac] sm:$0x1]  ;;  %v1882_v61 = vld [vmem:[%s2553_s8 + $0x18] sm:$0xf] }
  0x39   : > { %2144 = vmatpush3.bf16.msra.mxu0 %v2351_v30  ;;  %1500 = vmatmul.mubr.bf16.gmra.mrb[8].mxu1 %v1914_v42  ;;  %v324_v9 = vrot.slane %v322_v2, 4  ;;  %v327_v10 = vrot.slane %v325_v3, 5  ;;  %v315_v14 = vrot.slane %v314_v11, 4  ;;  %v465_v30 = vrot.slane %v463_v62, 5  ;;  %v2747_v42 = vld [vmem:[%s2553_s8 + $0x10] sm:$0xf] }
  0x3a   : > { %2184 = vmatpush3.bf16.msra.mxu1 %v2352_v32  ;;  %2145 = vmatprep.subr.bf16.mxu0 %v2353_v15  ;;  %v2367_v32 = vld [vmem:[%s2882_s1 + $0x1b8] sm:$0xff]   ;;  %v385_v15 = vshll.u32 %v1873_v34, 16  ;;  %v413_v57 = vshll.u32 %v1875_v54, 16  ;;  %v2769_v62 = vrot.slane %v452_v47, 4  ;;  %v1883_v0 = vld [vmem:[%s2553_s8 + $0x20] sm:$0xf] }
  0x3b   : > { %2185 = vmatprep.subr.bf16.mxu1 %v2354_v36  ;;  %1442 = vmatprep.mubr.bf16.mxu0 %v2357_v45  ;;  %v328_v16 = vor.u32 %v327_v10, %v324_v9  ;;  %v320_v20 = vsel %vm2571_vm2, %v315_v14, %v319_v12  ;;  %v438_v36 = vor.u32 %v2699_v49, %v2697_v48  ;;  %v528_v1 = vshrl.u32 %v1882_v61, 16  ;;  %v1876_v14 = vld [vmem:[%s2553_s8 + $0xb4] sm:$0x1]  ;;  %v2377_v18 = vld [vmem:[%s2882_s1 + $0x218] sm:$0xff]  }
  0x3c   : > { %1507 = vmatprep.mubr.bf16.mxu1 %v1919_v53  ;;  %v387_v38 = vrot.slane %v385_v15, 5  ;;  %v466_v48 = vor.u32 %v465_v30, %v462_v27  ;;  %v1874_v53 = vld [vmem:[%s2553_s8 + $0xa4] sm:$0x1]  ;;  %v415_v60 = vrot.slane %v413_v57, 5  ;;  %v531_v2 = vshll.u32 %v1882_v61, 16 }
  0x3d   : > { %2146 = vmatpush3.bf16.msra.mxu0 %v2355_v41  ;;  %v329_v23 = vrot.slane %v328_v16, 4  ;;  %v2744_v41 = vld [vmem:[%s2553_s8 + $0x8] sm:$0xf]  ;;  %v2765_v56 = vrot.slane %v438_v36, 4  ;;  %v542_v6 = vshrl.u32 %v1883_v0, 16  ;;  %v530_v10 = vrot.slane %v528_v1, 4 }
  0x3e   : > { %2186 = vmatpush3.bf16.msra.mxu1 %v2356_v43  ;;  %2147 = vmatprep.subr.bf16.mxu0 %v2360_v7  ;;  %v374_v43 = vsel %vm2571_vm2, %v2615_v21, %v373_v37  ;;  %v388_v45 = vsel %vm2571_vm2, %v2682_v39, %v387_v38  ;;  %v1928_v50 = vcombine.low %v2744_v41, %v2747_v42  ;;  %v2372_v21 = vld [vmem:[%s2882_s1 + $0x208] sm:$0xff]   ;;  %v399_v39 = vshll.u32 %v1874_v53, 16  ;;  %v2379_v15 = vld [vmem:[%s2553_s8 + $0xf8] ss:$8 sps:$4 sm:$0xff]  }
  0x3f   : > { %2187 = vmatprep.subr.bf16.mxu1 %v2361_v8  ;;  %v334_v28 = vsel %vm2571_vm2, %v329_v23, %v333_v13  ;;  %v1924_v49 = vcombine.low %v374_v43, %v388_v45  ;;  %v2771_v63 = vrot.slane %v466_v48, 4  ;;  %v545_v7 = vshll.u32 %v1883_v0, 16  ;;  %v2376_v8 = vld [vmem:[%s2882_s1 + $0x210] sm:$0xff]   ;;  %v1884_v27 = vld [vmem:[%s2553_s8 + $0x28] sm:$0xf] }
  0x40   : > { %1443 = vmatmul.mubr.bf16.gmra.mrb[12].mxu0 %v1907_v4  ;;  %v1915_v31 = vcombine.low %v320_v20, %v334_v28  ;;  %v401_v59 = vrot.slane %v399_v39, 5  ;;  %v416_v4 = vsel %vm2571_vm2, %v2702_v51, %v415_v60  ;;  %v533_v11 = vrot.slane %v531_v2, 5  ;;  %v1885_v28 = vld [vmem:[%s2553_s8 + $0x30] sm:$0xf]  ;;  %v1886_v39 = vld [vmem:[%s2553_s8 + $0x38] sm:$0xf] }
  0x41   : > { %2148 = vmatpush3.bf16.msra.mxu0 %v2362_v17  ;;  %1548 = vmatprep.mubr.bf16.mxu0 %v1924_v49  ;;  %v544_v12 = vrot.slane %v542_v6, 4  ;;  %v547_v13 = vrot.slane %v545_v7, 5  ;;  %v1929_v51 = vcombine.low %v1882_v61, %v1883_v0  ;;  %v427_v16 = vshll.u32 %v1876_v14, 16  ;;  %v1887_v57 = vld [vmem:[%s2553_s8 + $0x40] sm:$0xf]  ;;  %v2386_v0 = vld [vmem:[%s2882_s1 + $0x230] sm:$0xff]  }
  0x42   : > { %2188 = vmatpush3.bf16.msra.mxu1 %v2363_v19  ;;  %2149 = vmatprep.subr.bf16.mxu0 %v2364_v24  ;;  %v402_v3 = vsel %vm2571_vm2, %v2692_v44, %v401_v59  ;;  %v1877_v44 = vld [vmem:[%s2553_s8 + $0xbc] sm:$0x1]  ;;  %v500_v19 = vshrl.u32 %v2744_v41, 16  ;;  %v534_v20 = vor.u32 %v533_v11, %v530_v10  ;;  %v503_v30 = vshll.u32 %v2744_v41, 16  ;;  %v1896_v7 = vld [vmem:[%s2553_s8 + $0xc] sm:$0x1] }
  0x43   : > { %2189 = vmatprep.subr.bf16.mxu1 %v2365_v26  ;;  %1508 = vmatmul.mubr.bf16.gmra.mrb[12].mxu1 %v1915_v31  ;;  %v1925_v9 = vcombine.low %v402_v3, %v416_v4  ;;  %v441_v17 = vshll.u32 %v1877_v44, 16  ;;  %v548_v23 = vor.u32 %v547_v13, %v544_v12  ;;  %v429_v24 = vrot.slane %v427_v16, 5  ;;  %v2378_v26 = vld [vmem:[%s2553_s8 + $0x70] ss:$8 sps:$4 sm:$0xff]   ;;  %v1900_v14 = vld [vmem:[%s2553_s8 + $0x2c] sm:$0x1] }
  0x44   : > { %1613 = vmatprep.mubr.bf16.mxu1 %v2368_v22  ;;  %v556_v33 = vshrl.u32 %v1884_v27, 16  ;;  %v559_v34 = vshll.u32 %v1884_v27, 16  ;;  %v570_v22 = vshrl.u32 %v1885_v28, 16  ;;  %v573_v36 = vshll.u32 %v1885_v28, 16 }
  0x45   : > { %2150 = vmatpush3.bf16.msra.mxu0 %v2366_v29  ;;  %v443_v25 = vrot.slane %v441_v17, 5  ;;  %v2381_v29 = vld [vmem:[%s2882_s1 + $0x220] sm:$0xff]   ;;  %v430_v31 = vsel %vm2571_vm2, %v2704_v52, %v429_v24  ;;  %v2804_v37 = vrot.slane %v534_v20, 4  ;;  %v2806_v38 = vrot.slane %v548_v23, 4  ;;  %v1879_v52 = vld [vmem:[%s2553_s8 + $0xcc] sm:$0x1] }
  0x46   : > { %2190 = vmatpush3.bf16.msra.mxu1 %v2367_v32  ;;  %2227 = vmatprep.subr.bf16.mxu0 %v2371_v46  ;;  %v558_v43 = vrot.slane %v556_v33, 4  ;;  %v561_v45 = vrot.slane %v559_v34, 5  ;;  %v469_v48 = vshll.u32 %v1879_v52, 16  ;;  %v2813_v49 = vrot.slane %v570_v22, 4  ;;  %v1901_v20 = vld [vmem:[%s2553_s8 + $0x34] sm:$0x1] }
  0x47   : > { %2251 = vmatprep.subr.bf16.mxu1 %v2371_v46  ;;  %v444_v32 = vsel %vm2571_vm2, %v2765_v56, %v443_v25  ;;  %v2383_v56 = vld [vmem:[%s2553_s8 + $0x80] ss:$8 sps:$4 sm:$0xff]   ;;  %v584_v60 = vshrl.u32 %v1886_v39, 16  ;;  %v587_v61 = vshll.u32 %v1886_v39, 16  ;;  %v598_v2 = vshrl.u32 %v1887_v57, 16 }
  0x48   : > { %1549 = vmatmul.mubr.bf16.vlgmr.msra.gmra.mrb[16].mxu0 %v2369_v40  ;;  %v1926_v35 = vcombine.low %v430_v31, %v444_v32  ;;  %v1878_v40 = vld [vmem:[%s2553_s8 + $0xc4] sm:$0x1]  ;;  %v471_v54 = vrot.slane %v469_v48, 5  ;;  %v601_v3 = vshll.u32 %v1887_v57, 16  ;;  %v562_v4 = vor.u32 %v561_v45, %v558_v43  ;;  %v1898_v25 = vld [vmem:[%s2553_s8 + $0x1c] sm:$0x1] }
  0x49   : > { %2228 = vmatpush3.bf16.msra.mxu0 %v2371_v46  ;;  %1556 = vmatprep.mubr.bf16.mxu0 %v1925_v9  ;;  %v455_v47 = vshll.u32 %v1878_v40, 16  ;;  %v1931_v6 = vcombine.low %v1886_v39, %v1887_v57  ;;  %v600_v10 = vrot.slane %v598_v2, 4  ;;  %v502_v12 = vrot.slane %v500_v19, 4  ;;  %v1902_v31 = vld [vmem:[%s2553_s8 + $0x3c] sm:$0x1] }
  0x4a   : > { %2229 = vmatprep.subr.bf16.mxu0 %v2372_v21  ;;  %v472_v59 = vsel %vm2571_vm2, %v2771_v63, %v471_v54  ;;  %v589_v63 = vrot.slane %v587_v61, 5  ;;  %v603_v11 = vrot.slane %v601_v3, 5  ;;  %v505_v13 = vrot.slane %v503_v30, 5 }
  0x4b   : > { %1614 = vmatmul.mubr.bf16.vlgmr.msra.gmra.mrb[16].mxu1 %v1928_v50  ;;  %v2815_v50 = vrot.slane %v573_v36, 5  ;;  %v457_v53 = vrot.slane %v455_v47, 5  ;;  %v509_v16 = vshll.u32 %v1896_v7, 16  ;;  %v514_v17 = vshrl.u32 %v2747_v42, 16 }
  0x4c   : > { %2259 = vmatpush3.bf16.msra.mxu1 %v2371_v46  ;;  %1621 = vmatprep.mubr.bf16.mxu1 %v2373_v58  ;;  %v2382_v46 = vld [vmem:[%s2882_s1 + $0x228] sm:$0xff]   ;;  %v604_v41 = vor.u32 %v603_v11, %v600_v10  ;;  %v506_v23 = vor.u32 %v505_v13, %v502_v12  ;;  %v563_v24 = vrot.slane %v562_v4, 4  ;;  %v565_v34 = vshll.u32 %v1900_v14, 16 }
  0x4d   : > { %2252 = vmatprep.subr.bf16.mxu1 %v2372_v21  ;;  %2230 = vmatpush3.bf16.msra.mxu0 %v2372_v21  ;;  %v458_v58 = vsel %vm2571_vm2, %v2769_v62, %v457_v53  ;;  %v2384_v62 = vld [vmem:[%s2553_s8 + $0x108] ss:$8 sps:$4 sm:$0xff]   ;;  %v576_v9 = vor.u32 %v2815_v50, %v2813_v49  ;;  %v579_v36 = vshll.u32 %v1901_v20, 16  ;;  %v537_v40 = vshll.u32 %v1898_v25, 16 }
  0x4e   : > { %2231 = vmatprep.subr.bf16.mxu0 %v2376_v8  ;;  %v1927_v1 = vcombine.low %v458_v58, %v472_v59  ;;  %v605_v32 = vrot.slane %v604_v41, 4  ;;  %v507_v33 = vrot.slane %v506_v23, 4  ;;  %v567_v43 = vrot.slane %v565_v34, 5 }
  0x4f   : > { %v577_v22 = vrot.slane %v576_v9, 4  ;;  %v581_v48 = vrot.slane %v579_v36, 5  ;;  %v539_v49 = vrot.slane %v537_v40, 5 }
  0x50   : > { %2260 = vmatpush3.bf16.msra.mxu1 %v2372_v21  ;;  %1557 = vmatmul.mubr.bf16.gmra.mrb[20].mxu0 %v2374_v5  ;;  %v1930_v21 = vcombine.low %v1884_v27, %v1885_v28  ;;  %v586_v5 = vrot.slane %v584_v60, 4  ;;  %v511_v28 = vrot.slane %v509_v16, 5 }
  0x51   : > { %2253 = vmatprep.subr.bf16.mxu1 %v2376_v8  ;;  %2232 = vmatpush3.bf16.msra.mxu0 %v2376_v8  ;;  %v582_v39 = vsel %vm2571_vm2, %v577_v22, %v581_v48  ;;  %v540_v57 = vsel %vm2571_vm2, %v2804_v37, %v539_v49 }
  0x52   : > { %2233 = vmatprep.subr.bf16.mxu0 %v2377_v18  ;;  %1564 = vmatprep.mubr.bf16.mxu0 %v1926_v35  ;;  %v590_v44 = vor.u32 %v589_v63, %v586_v5  ;;  %v1903_v35 = vld [vmem:[%s2553_s8 + $0x44] sm:$0x1]  ;;  %v512_v52 = vsel %vm2571_vm2, %v507_v33, %v511_v28 }
  0x53   : > { %1622 = vmatmul.mubr.bf16.gmra.mrb[20].mxu1 %v1929_v51  ;;  %v2387_v51 = vld [vmem:[%s2882_s1 + $0x238] sm:$0xff]   ;;  %v607_v50 = vshll.u32 %v1903_v35, 16 }
  0x54   : > { %2261 = vmatpush3.bf16.msra.mxu1 %v2376_v8  ;;  %1629 = vmatprep.mubr.bf16.mxu1 %v2378_v26  ;;  %v1897_v8 = vld [vmem:[%s2553_s8 + $0x14] sm:$0x1]  ;;  %v1899_v26 = vld [vmem:[%s2553_s8 + $0x24] sm:$0x1]  ;;  %v591_v27 = vrot.slane %v590_v44, 4 }
  0x55   : > { %2254 = vmatprep.subr.bf16.mxu1 %v2377_v18  ;;  %2234 = vmatpush3.bf16.msra.mxu0 %v2377_v18  ;;  %v523_v19 = vshll.u32 %v1897_v8, 16  ;;  %v551_v45 = vshll.u32 %v1899_v26, 16  ;;  %v609_v58 = vrot.slane %v607_v50, 5 }
  0x56   : > { %2235 = vmatprep.subr.bf16.mxu0 %v2381_v29 }
  0x57   : > { %v553_v53 = vrot.slane %v551_v45, 5  ;;  %v610_v2 = vsel %vm2571_vm2, %v605_v32, %v609_v58 }
  0x58   : > { %2262 = vmatpush3.bf16.msra.mxu1 %v2377_v18  ;;  %1565 = vmatmul.mubr.bf16.gmra.mrb[24].mxu0 %v2379_v15  ;;  %v517_v18 = vshll.u32 %v2747_v42, 16  ;;  %v525_v42 = vrot.slane %v523_v19, 5 }
  0x59   : > { %2255 = vmatprep.subr.bf16.mxu1 %v2381_v29  ;;  %2236 = vmatpush3.bf16.msra.mxu0 %v2381_v29  ;;  %v554_v61 = vsel %vm2571_vm2, %v2806_v38, %v553_v53  ;;  %v1940_v38 = vld [vmem:[%s2883_s2] ss:$0 sm:$0xff] }
  0x5a   : > { %2237 = vmatprep.subr.bf16.mxu0 %v2382_v46  ;;  %1572 = vmatprep.mubr.bf16.mxu0 %v1927_v1  ;;  %v519_v30 = vrot.slane %v517_v18, 5  ;;  %v1937_v1 = vcombine.low %v540_v57, %v554_v61 }
  0x5b   : > { %1630 = vmatmul.mubr.bf16.gmra.mrb[24].mxu1 %v1930_v21  ;;  %v568_v21 = vsel %vm2571_vm2, %v563_v24, %v567_v43 }
  0x5c   : > { %2263 = vmatpush3.bf16.msra.mxu1 %v2381_v29  ;;  %1637 = vmatprep.mubr.bf16.mxu1 %v2383_v56  ;;  %v516_v29 = vrot.slane %v514_v17, 4  ;;  %v1938_v60 = vcombine.low %v568_v21, %v582_v39 }
  0x5d   : > { %2256 = vmatprep.subr.bf16.mxu1 %v2382_v46  ;;  %2238 = vmatpush3.bf16.msra.mxu0 %v2382_v46 }
  0x5e   : > { %2239 = vmatprep.subr.bf16.mxu0 %v2386_v0  ;;  %v520_v15 = vor.u32 %v519_v30, %v516_v29 }
  0x60   : > { %2264 = vmatpush3.bf16.msra.mxu1 %v2382_v46  ;;  %1573 = vmatmul.mubr.bf16.gmra.mrb[28].mxu0 %v2384_v62  ;;  %v593_v46 = vshll.u32 %v1902_v31, 16  ;;  %v521_v47 = vrot.slane %v520_v15, 4 }
  0x61   : > { %2257 = vmatprep.subr.bf16.mxu1 %v2386_v0  ;;  %2240 = vmatpush3.bf16.msra.mxu0 %v2386_v0 }
  0x62   : > { %2241 = vmatprep.subr.bf16.mxu0 %v2387_v51  ;;  %v595_v54 = vrot.slane %v593_v46, 5  ;;  %v526_v56 = vsel %vm2571_vm2, %v521_v47, %v525_v42 }
  0x63   : > { %1638 = vmatmul.mubr.bf16.gmra.mrb[28].mxu1 %v1931_v6  ;;  %v1936_v59 = vcombine.low %v512_v52, %v526_v56 }
  0x64   : > { %2265 = vmatpush3.bf16.msra.mxu1 %v2386_v0  ;;  %v596_v0 = vsel %vm2571_vm2, %v591_v27, %v595_v54  ;;  %2247 = vmatprep.mubr.bf16.mxu1 %v1938_v60 }
  0x65   : > { %2258 = vmatprep.subr.bf16.mxu1 %v2387_v51  ;;  %2242 = vmatpush3.bf16.msra.mxu0 %v2387_v51  ;;  %v1939_v3 = vcombine.low %v596_v0, %v610_v2 }
  0x66   : > { %2243 = vmatprep.mubr.bf16.mxu0 %v1936_v59 }
  0x68   : > { %2266 = vmatpush3.bf16.msra.mxu1 %v2387_v51  ;;  %2244 = vmatmul.mubr.bf16.vlgmr.msra.gmra.mrb[32].mxu0 %v1937_v1 }
  0x6b   : > { %2248 = vmatmul.mubr.bf16.vlgmr.msra.gmra.mrb[32].mxu1 %v1939_v3 }
  0xfb   : > { %v2071_v37 = vpop.f32.mrb[0].mxu0 }
  0xfc   : > { %v2072_v4 = vpop.f32.mrb[1].mxu0  ;;  %v2111_v7 = vpop.f32.mrb[0].mxu1 }
  0xfd   : > { %v2073_v62 = vadd.f32 %v2072_v4, %v2071_v37  ;;  %v2074_v5 = vpop.f32.mrb[2].mxu0  ;;  %v2112_v9 = vpop.f32.mrb[1].mxu1 }
  0xfe   : > { %v2075_v63 = vpop.f32.mrb[3].mxu0  ;;  %v2113_v55 = vadd.f32 %v2112_v9, %v2111_v7  ;;  %v2114_v10 = vpop.f32.mrb[2].mxu1 }
  0xff   : > { %v2076_v6 = vadd.f32 %v2075_v63, %v2074_v5  ;;  %v1421_v8 = vadd.f32 %v2073_v62, %v1940_v38  ;;  %v2115_v12 = vpop.f32.mrb[3].mxu1 }
 0x100   : > { %v2116_v14 = vadd.f32 %v2115_v12, %v2114_v10 }
 0x101   : > { %v1424_v11 = vadd.f32 %v2076_v6, %v1940_v38  ;;  %v1486_v13 = vadd.f32 %v2113_v55, %v1421_v8 }
 0x103   : > { %v1489_v44 = vadd.f32 %v2116_v14, %v1424_v11  ;;  %v2077_v51 = vpop.f32.mrb[4].mxu0 }
 0x104   : > { %v2078_v16 = vpop.f32.mrb[5].mxu0  ;;  %v2117_v23 = vpop.f32.mrb[4].mxu1 }
 0x105   : > { %v2079_v17 = vadd.f32 %v2078_v16, %v2077_v51  ;;  %v2080_v18 = vpop.f32.mrb[6].mxu0  ;;  %v2118_v24 = vpop.f32.mrb[5].mxu1 }
 0x106   : > { %v2081_v20 = vpop.f32.mrb[7].mxu0  ;;  %v2119_v25 = vadd.f32 %v2118_v24, %v2117_v23  ;;  %v2120_v26 = vpop.f32.mrb[6].mxu1 }
 0x107   : > { %v2082_v41 = vadd.f32 %v2081_v20, %v2080_v18  ;;  %v1429_v19 = vadd.f32 %v2079_v17, %v1940_v38  ;;  %v2121_v28 = vpop.f32.mrb[7].mxu1 }
 0x108   : > { %v2122_v30 = vadd.f32 %v2121_v28, %v2120_v26 }
 0x109   : > { %v1432_v27 = vadd.f32 %v2082_v41, %v1940_v38  ;;  %v1494_v29 = vadd.f32 %v2119_v25, %v1429_v19 }
 0x10b   : > { %v1497_v31 = vadd.f32 %v2122_v30, %v1432_v27  ;;  %v2083_v32 = vpop.f32.mrb[8].mxu0 }
 0x10c   : > { %v2084_v33 = vpop.f32.mrb[9].mxu0  ;;  %v2123_v22 = vpop.f32.mrb[8].mxu1 }
 0x10d   : > { %v2085_v42 = vadd.f32 %v2084_v33, %v2083_v32  ;;  %v2086_v34 = vpop.f32.mrb[10].mxu0  ;;  %v2124_v40 = vpop.f32.mrb[9].mxu1 }
 0x10e   : > { %v2087_v35 = vpop.f32.mrb[11].mxu0  ;;  %v2125_v52 = vadd.f32 %v2124_v40, %v2123_v22  ;;  %v2126_v43 = vpop.f32.mrb[10].mxu1 }
 0x10f   : > { %v2088_v15 = vadd.f32 %v2087_v35, %v2086_v34  ;;  %v1437_v36 = vadd.f32 %v2085_v42, %v1940_v38  ;;  %v2127_v46 = vpop.f32.mrb[11].mxu1 }
 0x110   : > { %v2128_v48 = vadd.f32 %v2127_v46, %v2126_v43 }
 0x111   : > { %v1440_v45 = vadd.f32 %v2088_v15, %v1940_v38  ;;  %v1502_v47 = vadd.f32 %v2125_v52, %v1437_v36 }
 0x113   : > { %v1505_v49 = vadd.f32 %v2128_v48, %v1440_v45  ;;  %v2089_v50 = vpop.f32.mrb[12].mxu0 }
 0x114   : > { %v2090_v21 = vpop.f32.mrb[13].mxu0 }
 0x115   : > { %v2091_v53 = vadd.f32 %v2090_v21, %v2089_v50  ;;  %v2092_v54 = vpop.f32.mrb[14].mxu0 }
 0x116   : > { %v2093_v56 = vpop.f32.mrb[15].mxu0  ;;  %v2129_v57 = vpop.f32.mrb[12].mxu1 }
 0x117   : > { %v2094_v39 = vadd.f32 %v2093_v56, %v2092_v54  ;;  %v1445_v58 = vadd.f32 %v2091_v53, %v1940_v38  ;;  %v2130_v59 = vpop.f32.mrb[13].mxu1 }
 0x118   : > { %v2131_v60 = vadd.f32 %v2130_v59, %v2129_v57  ;;  %v2132_v61 = vpop.f32.mrb[14].mxu1 }
 0x119   : > { %v1448_v0 = vadd.f32 %v2094_v39, %v1940_v38  ;;  %v2133_v1 = vpop.f32.mrb[15].mxu1 }
 0x11a   : > { %v1510_v2 = vadd.f32 %v2131_v60, %v1445_v58  ;;  %v2134_v3 = vadd.f32 %v2133_v1, %v2132_v61 }
 0x11b   : > { %v2151_v4 = vpop.f32.mrb[16].mxu0 }
 0x11c   : > { %v1513_v37 = vadd.f32 %v2134_v3, %v1448_v0  ;;  %v2152_v5 = vpop.f32.mrb[17].mxu0 }
 0x11d   : > { %v2153_v63 = vadd.f32 %v2152_v5, %v2151_v4  ;;  %v2154_v7 = vpop.f32.mrb[18].mxu0 }
 0x11e   : > { %v2191_v62 = vpop.f32.mrb[16].mxu1  ;;  %v2155_v55 = vpop.f32.mrb[19].mxu0 }
 0x11f   : > { %v2192_v6 = vpop.f32.mrb[17].mxu1  ;;  %v1551_v10 = vadd.f32 %v2153_v63, %v1486_v13  ;;  %v2156_v11 = vadd.f32 %v2155_v55, %v2154_v7 }
 0x120   : > { %v2193_v8 = vadd.f32 %v2192_v6, %v2191_v62  ;;  %v2194_v9 = vpop.f32.mrb[18].mxu1 }
 0x121   : > { %v2195_v12 = vpop.f32.mrb[19].mxu1  ;;  %v1554_v51 = vadd.f32 %v2156_v11, %v1489_v44 }
 0x122   : > { %v2196_v14 = vadd.f32 %v2195_v12, %v2194_v9  ;;  %v1616_v16 = vadd.f32 %v2193_v8, %v1551_v10 }
 0x123   : > { %v2157_v38 = vpop.f32.mrb[20].mxu0 }
 0x124   : > { %v1619_v17 = vadd.f32 %v2196_v14, %v1554_v51  ;;  %v2158_v20 = vpop.f32.mrb[21].mxu0 }
 0x125   : > { %v2159_v41 = vadd.f32 %v2158_v20, %v2157_v38  ;;  %v2160_v19 = vpop.f32.mrb[22].mxu0 }
 0x126   : > { %v2197_v18 = vpop.f32.mrb[20].mxu1  ;;  %v2161_v26 = vpop.f32.mrb[23].mxu0 }
 0x127   : > { %v2198_v23 = vpop.f32.mrb[21].mxu1  ;;  %v1559_v27 = vadd.f32 %v2159_v41, %v1494_v29  ;;  %v2162_v28 = vadd.f32 %v2161_v26, %v2160_v19 }
 0x128   : > { %v2199_v24 = vadd.f32 %v2198_v23, %v2197_v18  ;;  %v2200_v25 = vpop.f32.mrb[22].mxu1 }
 0x129   : > { %v2201_v30 = vpop.f32.mrb[23].mxu1  ;;  %v1562_v13 = vadd.f32 %v2162_v28, %v1497_v31 }
 0x12a   : > { %v2202_v32 = vadd.f32 %v2201_v30, %v2200_v25  ;;  %v1624_v33 = vadd.f32 %v2199_v24, %v1559_v27 }
 0x12b   : > { %v2163_v42 = vpop.f32.mrb[24].mxu0 }
 0x12c   : > { %v1627_v34 = vadd.f32 %v2202_v32, %v1562_v13  ;;  %v2164_v35 = vpop.f32.mrb[25].mxu0 }
 0x12d   : > { %v2165_v15 = vadd.f32 %v2164_v35, %v2163_v42  ;;  %v2166_v36 = vpop.f32.mrb[26].mxu0 }
 0x12e   : > { %v2203_v44 = vpop.f32.mrb[24].mxu1  ;;  %v2167_v43 = vpop.f32.mrb[27].mxu0 }
 0x12f   : > { %v2204_v22 = vpop.f32.mrb[25].mxu1  ;;  %v1567_v45 = vadd.f32 %v2165_v15, %v1502_v47  ;;  %v2168_v46 = vadd.f32 %v2167_v43, %v2166_v36 }
 0x130   : > { %v2205_v40 = vadd.f32 %v2204_v22, %v2203_v44  ;;  %v2206_v52 = vpop.f32.mrb[26].mxu1 }
 0x131   : > { %v2207_v48 = vpop.f32.mrb[27].mxu1  ;;  %v1570_v29 = vadd.f32 %v2168_v46, %v1505_v49 }
 0x132   : > { %v2208_v50 = vadd.f32 %v2207_v48, %v2206_v52  ;;  %v1632_v21 = vadd.f32 %v2205_v40, %v1567_v45 }
 0x133   : > { %v2169_v53 = vpop.f32.mrb[28].mxu0 }
 0x134   : > { %v1635_v54 = vadd.f32 %v2208_v50, %v1570_v29  ;;  %v2170_v56 = vpop.f32.mrb[29].mxu0 }
 0x135   : > { %v2171_v39 = vadd.f32 %v2170_v56, %v2169_v53  ;;  %v2172_v58 = vpop.f32.mrb[30].mxu0 }
 0x136   : > { %v2209_v31 = vpop.f32.mrb[28].mxu1  ;;  %v2173_v61 = vpop.f32.mrb[31].mxu0 }
 0x137   : > { %v2210_v57 = vpop.f32.mrb[29].mxu1  ;;  %v1575_v0 = vadd.f32 %v2171_v39, %v1510_v2  ;;  %v2174_v1 = vadd.f32 %v2173_v61, %v2172_v58 }
 0x138   : > { %v2211_v59 = vadd.f32 %v2210_v57, %v2209_v31  ;;  %v2212_v60 = vpop.f32.mrb[30].mxu1 }
 0x139   : > { %v2213_v3 = vpop.f32.mrb[31].mxu1  ;;  %v1578_v4 = vadd.f32 %v2174_v1, %v1513_v37 }
 0x13a   : > { %v2214_v47 = vadd.f32 %v2213_v3, %v2212_v60  ;;  %v1640_v62 = vadd.f32 %v2211_v59, %v1575_v0 }
 0x13b   : > { %v2245_v5 = vpop.f32.mrb[32].mxu0 }
 0x13c   : > { %v1643_v49 = vadd.f32 %v2214_v47, %v1578_v4  ;;  %v1689_v63 = vadd.f32 %v2245_v5, %v1624_v33  ;;  %v1680_v7 = vpop.f32.mrb[33].mxu0 }
 0x13d   : > { %v1681_v9 = vadd.f32 %v1680_v7, %v1616_v16  ;;  %v2246_v10 = vpop.f32.mrb[34].mxu0 }
 0x13e   : > { %v2249_v6 = vpop.f32.mrb[32].mxu1  ;;  %v1692_v12 = vadd.f32 %v2246_v10, %v1627_v34  ;;  %v1683_v2 = vpop.f32.mrb[35].mxu0  ;;  %v1713_v20 = vmax.f32 %v1689_v63, 0.0 }
 0x13f   : > { %v1705_v8 = vadd.f32 %v2249_v6, %v1640_v62  ;;  %v1696_v55 = vpop.f32.mrb[33].mxu1  ;;  %v1684_v38 = vadd.f32 %v1683_v2, %v1619_v17  ;;  %v1711_v19 = vmax.f32 %v1681_v9, 0.0 }
 0x140   : > { %v1697_v11 = vadd.f32 %v1696_v55, %v1632_v21  ;;  %v2250_v14 = vpop.f32.mrb[34].mxu1  ;;  %v1714_v37 = vmax.f32 %v1692_v12, 0.0 }
 0x141   : > { %v1708_v51 = vadd.f32 %v2250_v14, %v1643_v49  ;;  %v1699_v18 = vpop.f32.mrb[35].mxu1  ;;  %v1717_v23 = vmax.f32 %v1705_v8, 0.0  ;;  %v1712_v24 = vmax.f32 %v1684_v38, 0.0 }
 0x142   : > { %v1700_v41 = vadd.f32 %v1699_v18, %v1635_v54  ;;  %v1715_v25 = vmax.f32 %v1697_v11, 0.0  ;;  %v2040_v26 = vpack.c.bf16 %v1714_v37, %v1713_v20 }
 0x143   : > { %v1718_v16 = vmax.f32 %v1708_v51, 0.0  ;;  %v2035_v30 = vpack.c.bf16 %v1712_v24, %v1711_v19 }
 0x144   : > { %v1716_v27 = vmax.f32 %v1700_v41, 0.0  ;;  %2052 = vst [vmem:[%s192_s6 + $0x8] sm:$0xff] %v2040_v26  }
 0x145   : > { %v2050_v28 = vpack.c.bf16 %v1718_v16, %v1717_v23  ;;  %2036 = vst [vmem:[%s192_s6] sm:$0xff] %v2035_v30  }
 0x146   : > { %v2045_v32 = vpack.c.bf16 %v1716_v27, %v1715_v25 }
 0x147   : > { %2054 = vst [vmem:[%s192_s6 + $0x18] sm:$0xff] %v2050_v28  }
 0x148   : > { %2053 = vst [vmem:[%s192_s6 + $0x10] sm:$0xff] %v2045_v32  }
 0x149 PF: > { %s13_s14 = sadd.s32 1, %s2410_s14   ;;  %s2887_s12 = smov %s2406_s13 }
 0x14a   : > { %p10_p5 = scmp.ge.s32.totalorder %s13_s14, 4   ;;  %s2888_s13 = smov %s2890_s15 }
 0x14c   :  { %12 = sbr.rel (!%p10_p5) target bundleno = 2 (0x2), region = 67 }

// kernel: resnet_block_forward.3
= control target key start
LH: loop header
LB: loop body
LE: loop exit
PB: predicated region body
PF: predicated region fallthrough
CT: control target
= control target key end

     0   :  { %s2769_s15 = smov 0   ;;  %s2771_s16 = smov 0   ;;  %s3477_s0 = inlined_call_operand.vmem [shape: bf16[2,1,1,10,10,128], index: 0, kind: input, shape index: {}]   ;;  %s3478_s1 = inlined_call_operand.vmem [shape: bf16[2,64,128], index: 1, kind: input, shape index: {}]   ;;  %s3479_s2 = inlined_call_operand.vmem [shape: bf16[1280,128], index: 2, kind: input, shape index: {}]   ;;  %s3480_s3 = inlined_call_operand.vmem [shape: f32[1,128], index: 3, kind: input, shape index: {}]   ;;  %s3481_s4 = inlined_call_operand.vmem [shape: bf16[2,64,128], index: 4, kind: output, shape index: {}]  }
   0x1   :  { %s2773_s17 = smov 0  }
   0x2 LB: > { %s26_s18 = sadd.s32 1, %s2738_s16  ;;  %p2141_p0 = scmp.ge.s32.totalorder %s2742_s17, 1  ;;  %s2742_s17 = sphi %s2773_s17, %s14_s17   ;;  %s2738_s16 = sphi %s2771_s16, %s3487_s16   ;;  %s2734_s15 = sphi %s2769_s15, %s3486_s15  }
   0x3   : > { %p28_p1 = scmp.ge.s32.totalorder %s26_s18, 2  ;;  %p193_p2 = scmp.lt.s32.totalorder %s2742_s17, 3 }
   0x5   : > { %s3489_s18 = smov (%p28_p1, %s26_s18), 0  ;;  %p194_p3 = pnand %p2141_p0, %p193_p2 }
   0x6   : > { %v2624_v0 = vld [vmem:[%s3479_s2 + $0x40] sm:$0xff] (!%p194_p3)   ;;  %v2628_v4 = vld [vmem:[%s3479_s2 + $0x48] sm:$0xff] (!%p194_p3)   ;;  %v2632_v8 = vld [vmem:[%s3479_s2 + $0x50] sm:$0xff] (!%p194_p3)   ;;  %p232_p4 = scmp.lt.s32.totalorder (!%p194_p3), %s2734_s15, 1  ;;  %vm413_vm0 = vcmask (!%p194_p3), 1042432   ;;  %vm414_vm1 = vcmask (!%p194_p3), 1046532  }
   0x7   : > { %197 = sbr.rel (%p194_p3) target bundleno = 347 (0x15b), region = 36  ;;  %v2625_v1 = vld [vmem:[%s3479_s2 + $0xc0] sm:$0xff] (!%p194_p3)   ;;  %2383 = vmatprep.subr.bf16.mxu0 (!%p194_p3), %v2624_v0  ;;  %v2629_v5 = vld [vmem:[%s3479_s2 + $0xc8] sm:$0xff] (!%p194_p3)   ;;  %v2633_v9 = vld [vmem:[%s3479_s2 + $0xd0] sm:$0xff] (!%p194_p3)   ;;  %vm274_vm2 = vsmask.f32 (!%p194_p3), 3328 }
   0x8   : > { %v2626_v2 = vld [vmem:[%s3479_s2] sm:$0xff] (!%p194_p3)   ;;  %2423 = vmatprep.subr.bf16.mxu1 (!%p194_p3), %v2625_v1  ;;  %v2630_v6 = vld [vmem:[%s3479_s2 + $0x8] sm:$0xff] (!%p194_p3)   ;;  %v2634_v10 = vld [vmem:[%s3479_s2 + $0x10] sm:$0xff] (!%p194_p3)   ;;  %vm275_vm3 = vsmask.f32 (!%p194_p3), 7440 }
   0x9   : > { %v2627_v3 = vld [vmem:[%s3479_s2 + $0x80] sm:$0xff] (!%p194_p3)   ;;  %2384 = vmatpush3.bf16.msra.mxu0 (!%p194_p3), %v2626_v2  ;;  %v2631_v7 = vld [vmem:[%s3479_s2 + $0x88] sm:$0xff] (!%p194_p3)   ;;  %v2635_v11 = vld [vmem:[%s3479_s2 + $0x90] sm:$0xff] (!%p194_p3)  }
   0xa   : > { %2424 = vmatpush3.bf16.msra.mxu1 (!%p194_p3), %v2627_v3  ;;  %2385 = vmatprep.subr.bf16.mxu0 (!%p194_p3), %v2628_v4  ;;  %v2636_v12 = vld [vmem:[%s3479_s2 + $0x58] sm:$0xff] (!%p194_p3)   ;;  %v2640_v16 = vld [vmem:[%s3479_s2 + $0x60] sm:$0xff] (!%p194_p3)   ;;  %v2644_v20 = vld [vmem:[%s3479_s2 + $0x68] sm:$0xff] (!%p194_p3)  }
   0xb   : > { %2425 = vmatprep.subr.bf16.mxu1 (!%p194_p3), %v2629_v5  ;;  %v2637_v13 = vld [vmem:[%s3479_s2 + $0xd8] sm:$0xff] (!%p194_p3)   ;;  %v2641_v17 = vld [vmem:[%s3479_s2 + $0xe0] sm:$0xff] (!%p194_p3)   ;;  %v2645_v21 = vld [vmem:[%s3479_s2 + $0xe8] sm:$0xff] (!%p194_p3)  }
   0xc   : > { %v2638_v14 = vld [vmem:[%s3479_s2 + $0x18] sm:$0xff] (!%p194_p3)   ;;  %v2642_v18 = vld [vmem:[%s3479_s2 + $0x20] sm:$0xff] (!%p194_p3)   ;;  %v2646_v22 = vld [vmem:[%s3479_s2 + $0x28] sm:$0xff] (!%p194_p3)  }
   0xd   : > { %2386 = vmatpush3.bf16.msra.mxu0 (!%p194_p3), %v2630_v6  ;;  %v2639_v15 = vld [vmem:[%s3479_s2 + $0x98] sm:$0xff] (!%p194_p3)   ;;  %v2643_v19 = vld [vmem:[%s3479_s2 + $0xa0] sm:$0xff] (!%p194_p3)   ;;  %v2647_v23 = vld [vmem:[%s3479_s2 + $0xa8] sm:$0xff] (!%p194_p3)  }
   0xe   : > { %2426 = vmatpush3.bf16.msra.mxu1 %v2631_v7  ;;  %2387 = vmatprep.subr.bf16.mxu0 %v2632_v8  ;;  %s3491_s15 = smov (!%p232_p4, %s2734_s15), 1  ;;  %v2648_v24 = vld [vmem:[%s3479_s2 + $0x70] sm:$0xff]   ;;  %v2652_v28 = vld [vmem:[%s3479_s2 + $0x78] sm:$0xff]   ;;  %vm2911_vm4 = vmor %vm413_vm0, %vm414_vm1 }
   0xf   : > { %2427 = vmatprep.subr.bf16.mxu1 %v2633_v9  ;;  %v2649_v25 = vld [vmem:[%s3479_s2 + $0xf0] sm:$0xff]   ;;  %s2599_s27 = smul.u32 80, %s3491_s15  ;;  %v2653_v29 = vld [vmem:[%s3479_s2 + $0xf8] sm:$0xff]   ;;  %vm2917_vm5 = vmor %vm274_vm2, %vm275_vm3  ;;  %s2350_s5 = sshll.u32 %s3491_s15, 5 }
  0x10   : > { %v2650_v26 = vld [vmem:[%s3479_s2 + $0x30] sm:$0xff]   ;;  %v2654_v30 = vld [vmem:[%s3479_s2 + $0x38] sm:$0xff]   ;;  %v2658_v60 = vld [vmem:[%s3479_s2 + $0x140] sm:$0xff]   ;;  %s3397_s8 = scalar_lea.vmem %s3478_s1, %s2350_s5  ;;  %s255_s21 = scalar_lea.vmem %s3481_s4, %s2350_s5 }
  0x11   : > { %2388 = vmatpush3.bf16.msra.mxu0 %v2634_v10  ;;  %v2651_v27 = vld [vmem:[%s3479_s2 + $0xb0] sm:$0xff]   ;;  %s2887_s12 = scalar_lea.vmem %s3477_s0, %s2599_s27  ;;  %v2655_v31 = vld [vmem:[%s3479_s2 + $0xb8] sm:$0xff]   ;;  %v2659_v1 = vld [vmem:[%s3479_s2 + $0x1c0] sm:$0xff]  }
  0x12   : > { %2428 = vmatpush3.bf16.msra.mxu1 %v2635_v11  ;;  %2389 = vmatprep.subr.bf16.mxu0 %v2636_v12  ;;  %v258_v32 = vld [vmem:[%s2887_s12] sm:$0xf]  ;;  %v259_v33 = vld [vmem:[%s2887_s12 + $0x8] sm:$0xf]  ;;  %v266_v34 = vld [vmem:[%s2887_s12 + $0x4] sm:$0x1] }
  0x13   : > { %2429 = vmatprep.subr.bf16.mxu1 %v2637_v13  ;;  %v267_v35 = vld [vmem:[%s2887_s12 + $0xc] sm:$0x1]  ;;  %v278_v36 = vshrl.u32 %v258_v32, 16  ;;  %v281_v37 = vshll.u32 %v258_v32, 16  ;;  %v287_v38 = vshll.u32 %v266_v34, 16  ;;  %v292_v39 = vshrl.u32 %v259_v33, 16 }
  0x14   : > { %v295_v40 = vshll.u32 %v259_v33, 16  ;;  %v301_v41 = vshll.u32 %v267_v35, 16  ;;  %v2900_v42 = vld [vmem:[%s2887_s12 + $0x8] sm:$0xf]  ;;  %v2903_v43 = vld [vmem:[%s2887_s12 + $0x10] sm:$0xf]  ;;  %v2219_v6 = vcombine.low %v258_v32, %v259_v33 }
  0x15   : > { %2390 = vmatpush3.bf16.msra.mxu0 %v2638_v14  ;;  %v280_v44 = vrot.slane %v278_v36, 4  ;;  %v283_v45 = vrot.slane %v281_v37, 5  ;;  %v294_v46 = vrot.slane %v292_v39, 4  ;;  %v389_v47 = vld [vmem:[%s2887_s12] sm:$0xe]  ;;  %v418_v49 = vrot.slane %v266_v34, 5 }
  0x16   : > { %2430 = vmatpush3.bf16.msra.mxu1 %v2639_v15  ;;  %2391 = vmatprep.subr.bf16.mxu0 %v2640_v16  ;;  %v297_v48 = vrot.slane %v295_v40, 5  ;;  %v390_v50 = vld [vmem:[%s2887_s12 + $0x8] sm:$0xe]  ;;  %v289_v52 = vrot.slane %v287_v38, 5  ;;  %v422_v53 = vrot.slane %v267_v35, 5  ;;  %v2231_v54 = vcombine.low %v2900_v42, %v2903_v43  ;;  %v2660_v4 = vld [vmem:[%s3479_s2 + $0x100] sm:$0xff]  }
  0x17   : > { %2431 = vmatprep.subr.bf16.mxu1 %v2641_v17  ;;  %v284_v51 = vor.u32 %v283_v45, %v280_v44  ;;  %v303_v58 = vrot.slane %v301_v41, 5  ;;  %v2147_v59 = vrot.slane %v389_v47, 9  ;;  %v2148_v62 = vrot.slane %v390_v50, 9  ;;  %v2661_v8 = vld [vmem:[%s3479_s2 + $0x180] sm:$0xff]   ;;  %v2662_v10 = vld [vmem:[%s3479_s2 + $0x148] sm:$0xff]   ;;  %v2668_v37 = vld [vmem:[%s3479_s2 + $0x150] sm:$0xff]  }
  0x18   : > { %v298_v57 = vor.u32 %v297_v48, %v294_v46  ;;  %1762 = vmatprep.mubr.bf16.mxu1 %v2231_v54  ;;  %v2663_v11 = vld [vmem:[%s3479_s2 + $0x1c8] sm:$0xff]   ;;  %v2954_v14 = vld [vmem:[%s2887_s12 + $0x10] sm:$0xf]  ;;  %v2957_v15 = vld [vmem:[%s2887_s12 + $0x18] sm:$0xf]  ;;  %v469_v32 = vshll.u32 %v2900_v42, 16 }
  0x19   : > { %2392 = vmatpush3.bf16.msra.mxu0 %v2642_v18  ;;  %v285_v61 = vrot.slane %v284_v51, 4  ;;  %v419_v0 = vsel %vm2911_vm4, %v2147_v59, %v418_v49  ;;  %v423_v3 = vsel %vm2911_vm4, %v2148_v62, %v422_v53  ;;  %v2664_v12 = vld [vmem:[%s3479_s2 + $0x108] sm:$0xff]   ;;  %v268_v16 = vld [vmem:[%s2887_s12 + $0x14] sm:$0x1]  ;;  %v269_v17 = vld [vmem:[%s2887_s12 + $0x1c] sm:$0x1] }
  0x1a   : > { %2432 = vmatpush3.bf16.msra.mxu1 %v2643_v19  ;;  %2393 = vmatprep.subr.bf16.mxu0 %v2644_v20  ;;  %v299_v63 = vrot.slane %v298_v57, 4  ;;  %v2227_v7 = vcombine.low %v419_v0, %v423_v3  ;;  %v2665_v13 = vld [vmem:[%s3479_s2 + $0x188] sm:$0xff]   ;;  %v306_v18 = vshrl.u32 %v2954_v14, 16  ;;  %v309_v19 = vshll.u32 %v2954_v14, 16  ;;  %v392_v36 = vld [vmem:[%s2887_s12 + $0x18] sm:$0xe] }
  0x1b   : > { %2433 = vmatprep.subr.bf16.mxu1 %v2645_v21  ;;  %v290_v2 = vsel %vm2917_vm5, %v285_v61, %v289_v52  ;;  %v315_v20 = vshll.u32 %v268_v16, 16  ;;  %v320_v21 = vshrl.u32 %v2957_v15, 16  ;;  %v480_v33 = vshrl.u32 %v2903_v43, 16  ;;  %v2669_v50 = vld [vmem:[%s3479_s2 + $0x1d0] sm:$0xff]   ;;  %v2672_v0 = vld [vmem:[%s3479_s2 + $0x158] sm:$0xff]  }
  0x1c   : > { %v304_v5 = vsel %vm2917_vm5, %v299_v63, %v303_v58  ;;  %v483_v44 = vshll.u32 %v2903_v43, 16  ;;  %v2150_v46 = vrot.slane %v392_v36, 9  ;;  %v430_v49 = vrot.slane %v269_v17, 5  ;;  %v2670_v53 = vld [vmem:[%s3479_s2 + $0x110] sm:$0xff]  }
  0x1d   : > { %2394 = vmatpush3.bf16.msra.mxu0 %v2646_v22  ;;  %v2223_v9 = vcombine.low %v290_v2, %v304_v5  ;;  %v323_v22 = vshll.u32 %v2957_v15, 16  ;;  %v317_v35 = vrot.slane %v315_v20, 5  ;;  %v2987_v51 = vrot.slane %v469_v32, 5  ;;  %v2673_v2 = vld [vmem:[%s3479_s2 + $0x1d8] sm:$0xff]  }
  0x1e   : > { %2434 = vmatpush3.bf16.msra.mxu1 %v2647_v23  ;;  %2395 = vmatprep.subr.bf16.mxu0 %v2648_v24  ;;  %v329_v23 = vshll.u32 %v269_v17, 16  ;;  %v308_v24 = vrot.slane %v306_v18, 4  ;;  %v2996_v54 = vrot.slane %v480_v33, 4  ;;  %v2220_v58 = vcombine.low %v2954_v14, %v2957_v15  ;;  %v2159_v17 = vld [vmem:[%s2887_s12 + $0x28] sm:$0xf] }
  0x1f   : > { %2435 = vmatprep.subr.bf16.mxu1 %v2649_v25  ;;  %1697 = vmatprep.mubr.bf16.mxu0 %v2223_v9  ;;  %v311_v25 = vrot.slane %v309_v19, 5  ;;  %v431_v59 = vsel %vm2911_vm4, %v2150_v46, %v430_v49  ;;  %v3007_v61 = vrot.slane %v483_v44, 5  ;;  %v270_v9 = vld [vmem:[%s2887_s12 + $0x24] sm:$0x1]  ;;  %v3034_v18 = vld [vmem:[%s2887_s12 + $0x30] sm:$0xf] }
  0x20   : > { %v331_v39 = vrot.slane %v329_v23, 5  ;;  %v393_v23 = vld [vmem:[%s2887_s12 + $0x20] sm:$0xe]  ;;  %v525_v46 = vshll.u32 %v2159_v17, 16 }
  0x21   : > { %2396 = vmatpush3.bf16.msra.mxu0 %v2650_v26  ;;  %v2966_v26 = vld [vmem:[%s2887_s12 + $0x18] sm:$0xf]  ;;  %v312_v34 = vor.u32 %v311_v25, %v308_v24  ;;  %v2680_v49 = vld [vmem:[%s3479_s2 + $0x120] sm:$0xff]  }
  0x22   : > { %2436 = vmatpush3.bf16.msra.mxu1 %v2651_v27  ;;  %2397 = vmatprep.subr.bf16.mxu0 %v2652_v28  ;;  %v2969_v27 = vld [vmem:[%s2887_s12 + $0x20] sm:$0xf]  ;;  %v466_v28 = vshrl.u32 %v2900_v42, 16  ;;  %v426_v42 = vrot.slane %v268_v16, 5  ;;  %v497_v3 = vshll.u32 %v2966_v26, 16 }
  0x23   : > { %2437 = vmatprep.subr.bf16.mxu1 %v2653_v29  ;;  %v322_v29 = vrot.slane %v320_v21, 4  ;;  %v2232_v40 = vcombine.low %v2966_v26, %v2969_v27  ;;  %v313_v45 = vrot.slane %v312_v34, 4  ;;  %v508_v5 = vshrl.u32 %v2969_v27, 16 }
  0x24   : > { %v2982_v47 = vrot.slane %v466_v28, 4  ;;  %v511_v19 = vshll.u32 %v2969_v27, 16  ;;  %v3040_v25 = vrot.slane %v497_v3, 5  ;;  %v2678_v27 = vld [vmem:[%s3479_s2 + $0x160] sm:$0xff]  }
  0x25   : > { %2398 = vmatpush3.bf16.msra.mxu0 %v2654_v30  ;;  %v325_v30 = vrot.slane %v323_v22, 5  ;;  %v318_v52 = vsel %vm2917_vm5, %v313_v45, %v317_v35  ;;  %v3044_v32 = vrot.slane %v508_v5, 4  ;;  %v2151_v35 = vrot.slane %v393_v23, 9  ;;  %v2679_v45 = vld [vmem:[%s3479_s2 + $0x1e0] sm:$0xff]   ;;  %v3090_v5 = vld [vmem:[%s2887_s12 + $0x30] sm:$0xf] }
  0x26   : > { %2438 = vmatpush3.bf16.msra.mxu1 %v2655_v31  ;;  %2463 = vmatprep.subr.bf16.mxu0 %v2658_v60  ;;  %v391_v31 = vld [vmem:[%s2887_s12 + $0x10] sm:$0xe]  ;;  %v3049_v36 = vrot.slane %v511_v19, 5 }
  0x27   : > { %2503 = vmatprep.subr.bf16.mxu1 %v2659_v1  ;;  %v326_v38 = vor.u32 %v325_v30, %v322_v29  ;;  %v2149_v41 = vrot.slane %v391_v31, 9  ;;  %v2671_v60 = vld [vmem:[%s3479_s2 + $0x190] sm:$0xff]   ;;  %v494_v1 = vshrl.u32 %v2966_v26, 16  ;;  %v2233_v30 = vcombine.low %v2159_v17, %v3034_v18  ;;  %v394_v31 = vld [vmem:[%s2887_s12 + $0x28] sm:$0xe] }
  0x28   : > { %1698 = vmatmul.mubr.bf16.vlgmr.msra.gmra.mrb[0].mxu0 %v2219_v6  ;;  %v2675_v6 = vld [vmem:[%s3479_s2 + $0x198] sm:$0xff]  }
  0x29   : > { %1763 = vmatmul.mubr.bf16.vlgmr.msra.gmra.mrb[0].mxu1 %v2227_v7  ;;  %2464 = vmatpush3.bf16.msra.mxu0 %v2660_v4  ;;  %v327_v48 = vrot.slane %v326_v38, 4  ;;  %v427_v43 = vsel %vm2911_vm4, %v2149_v41, %v426_v42  ;;  %v2674_v4 = vld [vmem:[%s3479_s2 + $0x118] sm:$0xff]   ;;  %v3025_v7 = vld [vmem:[%s2887_s12 + $0x20] sm:$0xf]  ;;  %v3038_v24 = vrot.slane %v494_v1, 4  ;;  %v522_v38 = vshrl.u32 %v2159_v17, 16 }
  0x2a   : > { %2504 = vmatpush3.bf16.msra.mxu1 %v2661_v8  ;;  %2465 = vmatprep.subr.bf16.mxu0 %v2662_v10  ;;  %v2228_v63 = vcombine.low %v427_v43, %v431_v59  ;;  %v263_v8 = vld [vmem:[%s2887_s12 + $0x28] sm:$0xf]  ;;  %v271_v10 = vld [vmem:[%s2887_s12 + $0x2c] sm:$0x1]  ;;  %v2152_v41 = vrot.slane %v394_v31, 9  ;;  %v539_v59 = vshll.u32 %v3034_v18, 16 }
  0x2b   : > { %2505 = vmatprep.subr.bf16.mxu1 %v2663_v11  ;;  %1770 = vmatprep.mubr.bf16.mxu1 %v2232_v40  ;;  %v332_v57 = vsel %vm2917_vm5, %v327_v48, %v331_v39  ;;  %v334_v11 = vshrl.u32 %v3025_v7, 16  ;;  %v348_v14 = vshrl.u32 %v263_v8, 16  ;;  %v351_v15 = vshll.u32 %v263_v8, 16 }
  0x2c   : > { %v2224_v62 = vcombine.low %v318_v52, %v332_v57  ;;  %v357_v16 = vshll.u32 %v271_v10, 16  ;;  %v434_v39 = vrot.slane %v270_v9, 5  ;;  %v438_v44 = vrot.slane %v271_v10, 5  ;;  %v2681_v57 = vld [vmem:[%s3479_s2 + $0x1a0] sm:$0xff]   ;;  %v273_v10 = vld [vmem:[%s2887_s12 + $0x3c] sm:$0x1] }
  0x2d   : > { %2466 = vmatpush3.bf16.msra.mxu0 %v2664_v12  ;;  %v337_v12 = vshll.u32 %v3025_v7, 16  ;;  %v336_v20 = vrot.slane %v334_v11, 4  ;;  %v350_v22 = vrot.slane %v348_v14, 4  ;;  %v353_v28 = vrot.slane %v351_v15, 5  ;;  %v3108_v14 = vld [vmem:[%s2887_s12 + $0x38] sm:$0xf] }
  0x2e   : > { %2506 = vmatpush3.bf16.msra.mxu1 %v2665_v13  ;;  %2467 = vmatprep.subr.bf16.mxu0 %v2668_v37  ;;  %v343_v13 = vshll.u32 %v270_v9, 16  ;;  %v359_v34 = vrot.slane %v357_v16, 5  ;;  %v435_v48 = vsel %vm2911_vm4, %v2151_v35, %v434_v39  ;;  %v536_v52 = vshrl.u32 %v3034_v18, 16  ;;  %v272_v9 = vld [vmem:[%s2887_s12 + $0x34] sm:$0x1] }
  0x2f   : > { %2507 = vmatprep.subr.bf16.mxu1 %v2669_v50  ;;  %1705 = vmatprep.mubr.bf16.mxu0 %v2224_v62  ;;  %v339_v21 = vrot.slane %v337_v12, 5  ;;  %v354_v33 = vor.u32 %v353_v28, %v350_v22  ;;  %v2221_v43 = vcombine.low %v3025_v7, %v263_v8  ;;  %v2682_v62 = vld [vmem:[%s3479_s2 + $0x168] sm:$0xff]   ;;  %v3079_v1 = vrot.slane %v525_v46, 5  ;;  %v3097_v8 = vld [vmem:[%s2887_s12 + $0x38] sm:$0xf]  ;;  %v2688_v35 = vld [vmem:[%s3479_s2 + $0x170] sm:$0xff]  }
  0x30   : > { %1706 = vmatmul.mubr.bf16.gmra.mrb[4].mxu0 %v2220_v58  ;;  %v345_v26 = vrot.slane %v343_v13, 5  ;;  %v3084_v3 = vrot.slane %v536_v52, 4  ;;  %v486_v7 = vor.u32 %v3007_v61, %v2996_v54  ;;  %v500_v11 = vor.u32 %v3040_v25, %v3038_v24  ;;  %v3111_v15 = vld [vmem:[%s2887_s12 + $0x40] sm:$0xf]  ;;  %v396_v25 = vld [vmem:[%s2887_s12 + $0x38] sm:$0xe] }
  0x31   : > { %2468 = vmatpush3.bf16.msra.mxu0 %v2670_v53  ;;  %1771 = vmatmul.mubr.bf16.gmra.mrb[4].mxu1 %v2228_v63  ;;  %v340_v29 = vor.u32 %v339_v21, %v336_v20  ;;  %v355_v40 = vrot.slane %v354_v33, 4  ;;  %v439_v53 = vsel %vm2911_vm4, %v2152_v41, %v438_v44  ;;  %v3074_v63 = vrot.slane %v522_v38, 4  ;;  %v395_v21 = vld [vmem:[%s2887_s12 + $0x30] sm:$0xe] }
  0x32   : > { %2508 = vmatpush3.bf16.msra.mxu1 %v2671_v60  ;;  %2469 = vmatprep.subr.bf16.mxu0 %v2672_v0  ;;  %v2229_v60 = vcombine.low %v435_v48, %v439_v53  ;;  %v2683_v0 = vld [vmem:[%s3479_s2 + $0x1e8] sm:$0xff]   ;;  %v362_v12 = vshrl.u32 %v3090_v5, 16  ;;  %v365_v13 = vshll.u32 %v3090_v5, 16  ;;  %v379_v54 = vshll.u32 %v3097_v8, 16  ;;  %v2690_v48 = vld [vmem:[%s3479_s2 + $0x130] sm:$0xff]  }
  0x33   : > { %2509 = vmatprep.subr.bf16.mxu1 %v2673_v2  ;;  %v341_v37 = vrot.slane %v340_v29, 4  ;;  %1778 = vmatprep.mubr.bf16.mxu1 %v2233_v30  ;;  %v360_v50 = vsel %vm2917_vm5, %v355_v40, %v359_v34  ;;  %v2684_v2 = vld [vmem:[%s3479_s2 + $0x128] sm:$0xff]   ;;  %v385_v61 = vshll.u32 %v273_v10, 16  ;;  %v514_v16 = vor.u32 %v3049_v36, %v3044_v32 }
  0x34   : > { %v541_v17 = vrot.slane %v539_v59, 5  ;;  %v364_v18 = vrot.slane %v362_v12, 4  ;;  %v367_v19 = vrot.slane %v365_v13, 5  ;;  %v3118_v23 = vrot.slane %v486_v7, 4  ;;  %v2692_v59 = vld [vmem:[%s3479_s2 + $0x178] sm:$0xff]  }
  0x35   : > { %2470 = vmatpush3.bf16.msra.mxu0 %v2674_v4  ;;  %v346_v42 = vsel %vm2917_vm5, %v341_v37, %v345_v26  ;;  %v2685_v4 = vld [vmem:[%s3479_s2 + $0x1a8] sm:$0xff]   ;;  %v381_v24 = vrot.slane %v379_v54, 5  ;;  %v3121_v26 = vrot.slane %v500_v11, 4  ;;  %v387_v30 = vrot.slane %v385_v61, 5  ;;  %v3182_v61 = vld [vmem:[%s2887_s12 + $0x18] sm:$0xf] }
  0x36   : > { %2510 = vmatpush3.bf16.msra.mxu1 %v2675_v6  ;;  %2471 = vmatprep.subr.bf16.mxu0 %v2678_v27  ;;  %v2225_v58 = vcombine.low %v346_v42, %v360_v50  ;;  %v472_v6 = vor.u32 %v2987_v51, %v2982_v47  ;;  %v371_v47 = vshll.u32 %v272_v9, 16  ;;  %v376_v51 = vshrl.u32 %v3097_v8, 16  ;;  %v2689_v27 = vld [vmem:[%s3479_s2 + $0x1f0] sm:$0xff]  }
  0x37   : > { %2511 = vmatprep.subr.bf16.mxu1 %v2679_v45  ;;  %v368_v28 = vor.u32 %v367_v19, %v364_v18  ;;  %v2234_v31 = vcombine.low %v3108_v14, %v3111_v15  ;;  %v2153_v33 = vrot.slane %v395_v21, 9  ;;  %v442_v34 = vrot.slane %v272_v9, 5  ;;  %v2172_v9 = vld [vmem:[%s2887_s12 + $0x10] sm:$0xe]  ;;  %v3192_v18 = vld [vmem:[%s2887_s12 + $0x1c] sm:$0x1] }
  0x38   : > { %1713 = vmatprep.mubr.bf16.mxu0 %v2225_v58  ;;  %v378_v20 = vrot.slane %v376_v51, 4  ;;  %v3116_v22 = vrot.slane %v472_v6, 4  ;;  %v373_v29 = vrot.slane %v371_v47, 5  ;;  %v528_v36 = vor.u32 %v3079_v1, %v3074_v63  ;;  %v2693_v63 = vld [vmem:[%s3479_s2 + $0x1f8] sm:$0xff]   ;;  %v3179_v47 = vld [vmem:[%s2887_s12 + $0x10] sm:$0xf] }
  0x39   : > { %2472 = vmatpush3.bf16.msra.mxu0 %v2680_v49  ;;  %1779 = vmatmul.mubr.bf16.gmra.mrb[8].mxu1 %v2229_v60  ;;  %v369_v37 = vrot.slane %v368_v28, 4  ;;  %v2154_v38 = vrot.slane %v396_v25, 9  ;;  %v3133_v39 = vrot.slane %v514_v16, 4  ;;  %v542_v40 = vor.u32 %v541_v17, %v3084_v3  ;;  %v2694_v1 = vld [vmem:[%s3479_s2 + $0x138] sm:$0xff]  }
  0x3a   : > { %2512 = vmatpush3.bf16.msra.mxu1 %v2681_v57  ;;  %1714 = vmatmul.mubr.bf16.gmra.mrb[8].mxu0 %v2221_v43  ;;  %v382_v32 = vor.u32 %v381_v24, %v378_v20  ;;  %v443_v44 = vsel %vm2911_vm4, %v2153_v33, %v442_v34  ;;  %v446_v45 = vrot.slane %v273_v10, 5  ;;  %v550_v46 = vshrl.u32 %v3108_v14, 16  ;;  %v2691_v43 = vld [vmem:[%s3479_s2 + $0x1b0] sm:$0xff]   ;;  %v2695_v3 = vld [vmem:[%s3479_s2 + $0x1b8] sm:$0xff]  }
  0x3b   : > { %2473 = vmatprep.subr.bf16.mxu0 %v2682_v62  ;;  %2513 = vmatprep.subr.bf16.mxu1 %v2683_v0  ;;  %v374_v42 = vsel %vm2917_vm5, %v369_v37, %v373_v29  ;;  %v2222_v50 = vcombine.low %v3090_v5, %v3097_v8  ;;  %v3154_v53 = vrot.slane %v528_v36, 4  ;;  %v3159_v60 = vrot.slane %v542_v40, 4  ;;  %v2164_v5 = vld [vmem:[%s2887_s12 + $0x14] sm:$0x1]  ;;  %v2171_v8 = vld [vmem:[%s2887_s12 + $0x8] sm:$0xe] }
  0x3c   : > { %1786 = vmatprep.mubr.bf16.mxu1 %v2234_v31  ;;  %v383_v41 = vrot.slane %v382_v32, 4  ;;  %v447_v52 = vsel %vm2911_vm4, %v2154_v38, %v446_v45  ;;  %v553_v62 = vshll.u32 %v3108_v14, 16  ;;  %v3165_v0 = vrot.slane %v550_v46, 4  ;;  %v3185_v14 = vld [vmem:[%s2887_s12 + $0x14] sm:$0x1]  ;;  %v2697_v29 = vld [vmem:[%s3479_s2 + $0x240] sm:$0xff]  }
  0x3d   : > { %2474 = vmatpush3.bf16.msra.mxu0 %v2684_v2  ;;  %v2230_v58 = vcombine.low %v443_v44, %v447_v52  ;;  %v564_v2 = vshrl.u32 %v3111_v15, 16  ;;  %v489_v7 = vshll.u32 %v2164_v5, 16  ;;  %v2179_v10 = vrot.slane %v2171_v8, 9  ;;  %v2699_v46 = vld [vmem:[%s3479_s2 + $0x248] sm:$0xff]   ;;  %v2173_v52 = vld [vmem:[%s2887_s12 + $0x18] sm:$0xe] }
  0x3e   : > { %2514 = vmatpush3.bf16.msra.mxu1 %v2685_v4  ;;  %2475 = vmatprep.subr.bf16.mxu0 %v2688_v35  ;;  %v388_v49 = vsel %vm2917_vm5, %v383_v41, %v387_v30  ;;  %v2163_v4 = vld [vmem:[%s2887_s12 + $0xc] sm:$0x1]  ;;  %v2180_v12 = vrot.slane %v2172_v9, 9  ;;  %v607_v13 = vrot.slane %v2164_v5, 5  ;;  %v651_v19 = vshrl.u32 %v3179_v47, 16  ;;  %v2698_v41 = vld [vmem:[%s3479_s2 + $0x200] sm:$0xff]  }
  0x3f   : > { %2515 = vmatprep.subr.bf16.mxu1 %v2689_v27  ;;  %v2226_v57 = vcombine.low %v374_v42, %v388_v49  ;;  %v475_v6 = vshll.u32 %v2163_v4, 16  ;;  %v603_v11 = vrot.slane %v2163_v4, 5  ;;  %v491_v54 = vrot.slane %v489_v7, 5  ;;  %v2165_v49 = vld [vmem:[%s2887_s12 + $0x1c] sm:$0x1] }
  0x40   : > { %v608_v17 = vsel %vm2911_vm4, %v2180_v12, %v607_v13  ;;  %v654_v20 = vshll.u32 %v3179_v47, 16  ;;  %v660_v24 = vshll.u32 %v3185_v14, 16  ;;  %v665_v25 = vshrl.u32 %v3182_v61, 16  ;;  %v3239_v5 = vld [vmem:[%s2887_s12 + $0x28] sm:$0xf]  ;;  %v2702_v13 = vld [vmem:[%s3479_s2 + $0x250] sm:$0xff]  }
  0x41   : > { %2476 = vmatpush3.bf16.msra.mxu0 %v2690_v48  ;;  %1721 = vmatprep.mubr.bf16.mxu0 %v2226_v57  ;;  %v477_v51 = vrot.slane %v475_v6, 5  ;;  %v604_v16 = vsel %vm2911_vm4, %v2179_v10, %v603_v11  ;;  %v668_v28 = vshll.u32 %v3182_v61, 16  ;;  %v567_v30 = vshll.u32 %v3111_v15, 16  ;;  %v3242_v6 = vld [vmem:[%s2887_s12 + $0x24] sm:$0x1] }
  0x42   : > { %2516 = vmatpush3.bf16.msra.mxu1 %v2691_v43  ;;  %1722 = vmatmul.mubr.bf16.gmra.mrb[12].mxu0 %v2222_v50  ;;  %v2239_v21 = vcombine.low %v604_v16, %v608_v17  ;;  %v653_v31 = vrot.slane %v651_v19, 4  ;;  %v656_v32 = vrot.slane %v654_v20, 5  ;;  %v674_v33 = vshll.u32 %v3192_v18, 16  ;;  %v2166_v50 = vld [vmem:[%s2887_s12 + $0x24] sm:$0x1] }
  0x43   : > { %1787 = vmatmul.mubr.bf16.gmra.mrb[12].mxu1 %v2230_v58  ;;  %2477 = vmatprep.subr.bf16.mxu0 %v2692_v59  ;;  %v3204_v34 = vrot.slane %v553_v62, 5  ;;  %v3206_v35 = vrot.slane %v564_v2, 4  ;;  %v667_v27 = vrot.slane %v665_v25, 4  ;;  %v670_v36 = vrot.slane %v668_v28, 5  ;;  %v2174_v43 = vld [vmem:[%s2887_s12 + $0x20] sm:$0xe] }
  0x44   : > { %2517 = vmatprep.subr.bf16.mxu1 %v2693_v63  ;;  %1827 = vmatprep.mubr.bf16.mxu0 %v2239_v21  ;;  %v657_v37 = vor.u32 %v656_v32, %v653_v31  ;;  %v662_v38 = vrot.slane %v660_v24, 5  ;;  %v478_v15 = vsel %vm2917_vm5, %v3116_v22, %v477_v51  ;;  %v492_v40 = vsel %vm2917_vm5, %v3118_v23, %v491_v54  ;;  %v2700_v59 = vld [vmem:[%s3479_s2 + $0x208] sm:$0xff]   ;;  %v3232_v2 = vld [vmem:[%s2887_s12 + $0x20] sm:$0xf]  ;;  %v2704_v28 = vld [vmem:[%s3479_s2 + $0x258] sm:$0xff]  }
  0x45   : > { %2478 = vmatpush3.bf16.msra.mxu0 %v2694_v1  ;;  %v671_v44 = vor.u32 %v670_v36, %v667_v27  ;;  %v676_v45 = vrot.slane %v674_v33, 5  ;;  %v2235_v42 = vcombine.low %v478_v15, %v492_v40  ;;  %v3220_v48 = vrot.slane %v567_v30, 5  ;;  %v3245_v7 = vld [vmem:[%s2887_s12 + $0x2c] sm:$0x1]  ;;  %v3277_v15 = vld [vmem:[%s2887_s12 + $0x34] sm:$0x1] }
  0x46   : > { %2518 = vmatpush3.bf16.msra.mxu1 %v2695_v3  ;;  %2543 = vmatprep.subr.bf16.mxu0 %v2697_v29  ;;  %v658_v22 = vrot.slane %v657_v37, 4  ;;  %v611_v57 = vrot.slane %v2165_v49, 5  ;;  %v2181_v62 = vrot.slane %v2173_v52, 9  ;;  %v2182_v63 = vrot.slane %v2174_v43, 9  ;;  %v2175_v40 = vld [vmem:[%s2887_s12 + $0x28] sm:$0xe] }
  0x47   : > { %2583 = vmatprep.subr.bf16.mxu1 %v2697_v29  ;;  %v672_v23 = vrot.slane %v671_v44, 4  ;;  %v615_v1 = vrot.slane %v2166_v50, 5  ;;  %v2243_v4 = vcombine.low %v3179_v47, %v3182_v61  ;;  %v556_v8 = vor.u32 %v3204_v34, %v3165_v0  ;;  %v2703_v61 = vld [vmem:[%s3479_s2 + $0x210] sm:$0xff]  }
  0x48   : > { %v663_v58 = vsel %vm2917_vm5, %v658_v22, %v662_v38  ;;  %v612_v10 = vsel %vm2911_vm4, %v2181_v62, %v611_v57  ;;  %v679_v12 = vshrl.u32 %v3232_v2, 16  ;;  %v682_v51 = vshll.u32 %v3232_v2, 16  ;;  %v3274_v38 = vld [vmem:[%s2887_s12 + $0x2c] sm:$0x1]  ;;  %v3290_v52 = vld [vmem:[%s2887_s12 + $0x30] sm:$0xf] }
  0x49   : > { %v677_v3 = vsel %vm2917_vm5, %v672_v23, %v676_v45  ;;  %v616_v11 = vsel %vm2911_vm4, %v2182_v63, %v615_v1  ;;  %v688_v54 = vshll.u32 %v3242_v6, 16  ;;  %v693_v0 = vshrl.u32 %v3239_v5, 16  ;;  %v2705_v45 = vld [vmem:[%s3479_s2 + $0x218] sm:$0xff]   ;;  %v3305_v62 = vld [vmem:[%s2887_s12 + $0x34] sm:$0x1]  ;;  %v3313_v1 = vld [vmem:[%s3479_s2 + $0x220] sm:$0xff]  }
  0x4a   : > { %1828 = vmatmul.mubr.bf16.vlgmr.msra.gmra.mrb[16].mxu0 %v2235_v42  ;;  %v2247_v9 = vcombine.low %v663_v58, %v677_v3  ;;  %v2240_v47 = vcombine.low %v612_v10, %v616_v11  ;;  %v681_v16 = vrot.slane %v679_v12, 4  ;;  %v696_v17 = vshll.u32 %v3239_v5, 16  ;;  %v3308_v63 = vld [vmem:[%s2887_s12 + $0x3c] sm:$0x1] }
  0x4b   : > { %2544 = vmatpush3.bf16.msra.mxu0 %v2698_v41  ;;  %v702_v19 = vshll.u32 %v3245_v7, 16  ;;  %v503_v20 = vshll.u32 %v2165_v49, 16  ;;  %v684_v21 = vrot.slane %v682_v51, 5  ;;  %v695_v24 = vrot.slane %v693_v0, 4 }
  0x4c   : > { %2545 = vmatprep.subr.bf16.mxu0 %v2699_v46  ;;  %1892 = vmatprep.mubr.bf16.mxu1 %v2247_v9  ;;  %v517_v25 = vshll.u32 %v2166_v50, 16  ;;  %v690_v29 = vrot.slane %v688_v54, 5  ;;  %v698_v30 = vrot.slane %v696_v17, 5  ;;  %v3268_v32 = vrot.slane %v556_v8, 4  ;;  %v3326_v9 = vld [vmem:[%s3479_s2 + $0x268] sm:$0xff]  }
  0x4d   : > { %1893 = vmatmul.mubr.bf16.vlgmr.msra.gmra.mrb[16].mxu1 %v2243_v4  ;;  %1835 = vmatprep.mubr.bf16.mxu0 %v2240_v47  ;;  %v505_v31 = vrot.slane %v503_v20, 5  ;;  %v685_v33 = vor.u32 %v684_v21, %v681_v16  ;;  %v704_v34 = vrot.slane %v702_v19, 5  ;;  %v2183_v42 = vrot.slane %v2175_v40, 9 }
  0x4e   : > { %2591 = vmatpush3.bf16.msra.mxu1 %v2698_v41  ;;  %v519_v27 = vrot.slane %v517_v25, 5  ;;  %v699_v36 = vor.u32 %v698_v30, %v695_v24  ;;  %v623_v23 = vrot.slane %v3277_v15, 5  ;;  %v2244_v57 = vcombine.low %v3232_v2, %v3239_v5  ;;  %v2710_v24 = vld [vmem:[%s3479_s2 + $0x228] sm:$0xff]  }
  0x4f   : > { %2546 = vmatpush3.bf16.msra.mxu0 %v2700_v59  ;;  %2584 = vmatprep.subr.bf16.mxu1 %v2699_v46  ;;  %v506_v37 = vsel %vm2917_vm5, %v3121_v26, %v505_v31  ;;  %v686_v41 = vrot.slane %v685_v33, 4  ;;  %v2176_v26 = vld [vmem:[%s2887_s12 + $0x30] sm:$0xe]  ;;  %v619_v46 = vrot.slane %v3274_v38, 5  ;;  %v570_v3 = vor.u32 %v3220_v48, %v3206_v35 }
  0x50   : > { %2547 = vmatprep.subr.bf16.mxu0 %v2702_v13  ;;  %v520_v44 = vsel %vm2917_vm5, %v3133_v39, %v519_v27  ;;  %v700_v22 = vrot.slane %v699_v36, 4  ;;  %v2184_v50 = vrot.slane %v2176_v26, 9  ;;  %v2707_v39 = vld [vmem:[%s3479_s2 + $0x260] sm:$0xff]   ;;  %v707_v5 = vshrl.u32 %v3290_v52, 16  ;;  %v2177_v36 = vld [vmem:[%s2887_s12 + $0x38] sm:$0xe] }
  0x51   : > { %v2236_v49 = vcombine.low %v506_v37, %v520_v44  ;;  %v691_v43 = vsel %vm2917_vm5, %v686_v41, %v690_v29  ;;  %v620_v58 = vsel %vm2911_vm4, %v2183_v42, %v619_v46  ;;  %v710_v8 = vshll.u32 %v3290_v52, 16  ;;  %v3345_v29 = vld [vmem:[%s3479_s2 + $0x270] sm:$0xff]   ;;  %v2170_v27 = vld [vmem:[%s2887_s12 + $0x44] sm:$0x1]  ;;  %v3359_v46 = vld [vmem:[%s2887_s12 + $0x40] sm:$0xf] }
  0x52   : > { %2592 = vmatpush3.bf16.msra.mxu1 %v2700_v59  ;;  %v3302_v59 = vld [vmem:[%s2887_s12 + $0x38] sm:$0xf]  ;;  %v705_v2 = vsel %vm2917_vm5, %v700_v22, %v704_v34  ;;  %v624_v4 = vsel %vm2911_vm4, %v2184_v50, %v623_v23  ;;  %v716_v35 = vshll.u32 %v3305_v62, 16  ;;  %v709_v12 = vrot.slane %v707_v5, 4  ;;  %v3362_v22 = vld [vmem:[%s2887_s12 + $0x48] sm:$0xf] }
  0x53   : > { %2548 = vmatpush3.bf16.msra.mxu0 %v2703_v61  ;;  %2585 = vmatprep.subr.bf16.mxu1 %v2702_v13  ;;  %v2248_v10 = vcombine.low %v691_v43, %v705_v2  ;;  %v2241_v11 = vcombine.low %v620_v58, %v624_v4  ;;  %v721_v48 = vshrl.u32 %v3302_v59, 16  ;;  %v712_v13 = vrot.slane %v710_v8, 5  ;;  %v3370_v23 = vld [vmem:[%s2887_s12 + $0x44] sm:$0x1] }
  0x54   : > { %2549 = vmatprep.subr.bf16.mxu0 %v2704_v28  ;;  %1836 = vmatmul.mubr.bf16.gmra.mrb[20].mxu0 %v2236_v49  ;;  %v724_v47 = vshll.u32 %v3302_v59, 16  ;;  %v730_v51 = vshll.u32 %v3308_v63, 16  ;;  %v788_v54 = vrot.slane %v3185_v14, 5  ;;  %v718_v0 = vrot.slane %v716_v35, 5 }
  0x55   : > { %1900 = vmatprep.mubr.bf16.mxu1 %v2248_v10  ;;  %v723_v16 = vrot.slane %v721_v48, 4  ;;  %v3333_v17 = vrot.slane %v570_v3, 4  ;;  %1843 = vmatprep.mubr.bf16.mxu0 %v2241_v11  ;;  %v531_v21 = vshll.u32 %v3274_v38, 16  ;;  %v545_v25 = vshll.u32 %v3277_v15, 16  ;;  %v2178_v38 = vld [vmem:[%s2887_s12 + $0x40] sm:$0xe] }
  0x56   : > { %2593 = vmatpush3.bf16.msra.mxu1 %v2703_v61  ;;  %v713_v61 = vor.u32 %v712_v13, %v709_v12  ;;  %v726_v19 = vrot.slane %v724_v47, 5  ;;  %v732_v20 = vrot.slane %v730_v51, 5  ;;  %v2245_v34 = vcombine.low %v3290_v52, %v3302_v59  ;;  %v3373_v52 = vld [vmem:[%s2887_s12 + $0x4c] sm:$0x1]  ;;  %v2713_v59 = vld [vmem:[%s3479_s2 + $0x230] sm:$0xff]   ;;  %v2714_v12 = vld [vmem:[%s3479_s2 + $0x278] sm:$0xff]  }
  0x57   : > { %2550 = vmatpush3.bf16.msra.mxu0 %v2705_v45  ;;  %2586 = vmatprep.subr.bf16.mxu1 %v2704_v28  ;;  %v2169_v28 = vld [vmem:[%s2887_s12 + $0x3c] sm:$0x1]  ;;  %v533_v33 = vrot.slane %v531_v21, 5  ;;  %v547_v37 = vrot.slane %v545_v25, 5  ;;  %v2185_v15 = vrot.slane %v2177_v36, 9  ;;  %v631_v41 = vrot.slane %v2170_v27, 5 }
  0x58   : > { %2551 = vmatprep.subr.bf16.mxu0 %v2707_v39  ;;  %1901 = vmatmul.mubr.bf16.gmra.mrb[20].mxu1 %v2244_v57  ;;  %v714_v30 = vrot.slane %v713_v61, 4  ;;  %v727_v31 = vor.u32 %v726_v19, %v723_v16  ;;  %v627_v40 = vrot.slane %v2169_v28, 5  ;;  %v2186_v42 = vrot.slane %v2178_v38, 9 }
  0x59   : > { %v534_v26 = vsel %vm2917_vm5, %v3154_v53, %v533_v33  ;;  %v548_v49 = vsel %vm2917_vm5, %v3159_v60, %v547_v37  ;;  %v738_v53 = vshll.u32 %v3359_v46, 16  ;;  %v744_v58 = vshll.u32 %v3370_v23, 16 }
  0x5a   : > { %2594 = vmatpush3.bf16.msra.mxu1 %v2705_v45  ;;  %v719_v44 = vsel %vm2917_vm5, %v714_v30, %v718_v0  ;;  %v728_v45 = vrot.slane %v727_v31, 4  ;;  %v628_v50 = vsel %vm2911_vm4, %v2185_v15, %v627_v40  ;;  %v2237_v57 = vcombine.low %v534_v26, %v548_v49  ;;  %v2715_v0 = vld [vmem:[%s3479_s2 + $0x238] sm:$0xff]   ;;  %v2203_v30 = vld [vmem:[%s2887_s12 + $0x10] sm:$0xe]  ;;  %v2206_v26 = vld [vmem:[%s2887_s12 + $0x28] sm:$0xe] }
  0x5b   : > { %2552 = vmatpush3.bf16.msra.mxu0 %v3313_v1  ;;  %2587 = vmatprep.subr.bf16.mxu1 %v2707_v39  ;;  %v735_v39 = vshrl.u32 %v3359_v46, 16  ;;  %v632_v60 = vsel %vm2911_vm4, %v2186_v42, %v631_v41  ;;  %v740_v5 = vrot.slane %v738_v53, 5  ;;  %v792_v8 = vrot.slane %v3192_v18, 5  ;;  %v2204_v31 = vld [vmem:[%s2887_s12 + $0x18] sm:$0xe] }
  0x5c   : > { %2553 = vmatprep.subr.bf16.mxu0 %v3326_v9  ;;  %v733_v43 = vsel %vm2917_vm5, %v728_v45, %v732_v20  ;;  %v2242_v2 = vcombine.low %v628_v50, %v632_v60  ;;  %1844 = vmatmul.mubr.bf16.gmra.mrb[24].mxu0 %v2237_v57  ;;  %v752_v10 = vshll.u32 %v3362_v22, 16  ;;  %v758_v11 = vshll.u32 %v3373_v52, 16  ;;  %v2716_v20 = vld [vmem:[%s3397_s8] sm:$0xff]   ;;  %v2717_v45 = vld [vmem:[%s3397_s8 + $0x10] sm:$0xff]  }
  0x5d   : > { %v2249_v3 = vcombine.low %v719_v44, %v733_v43  ;;  %v737_v4 = vrot.slane %v735_v39, 4  ;;  %v746_v35 = vrot.slane %v744_v58, 5  ;;  %v559_v48 = vshll.u32 %v2169_v28, 16  ;;  %v2209_v53 = vld [vmem:[%s2887_s12 + $0x40] sm:$0xe] }
  0x5e   : > { %2595 = vmatpush3.bf16.msra.mxu1 %v3313_v1  ;;  %v749_v1 = vshrl.u32 %v3362_v22, 16  ;;  %1851 = vmatprep.mubr.bf16.mxu0 %v2242_v2  ;;  %v573_v18 = vshll.u32 %v2170_v27, 16  ;;  %v754_v47 = vrot.slane %v752_v10, 5  ;;  %v760_v51 = vrot.slane %v758_v11, 5  ;;  %v2210_v43 = vld [vmem:[%s2887_s12 + $0x48] sm:$0xe] }
  0x5f   : > { %2554 = vmatpush3.bf16.msra.mxu0 %v2710_v24  ;;  %2588 = vmatprep.subr.bf16.mxu1 %v3326_v9  ;;  %v741_v9 = vor.u32 %v740_v5, %v737_v4  ;;  %v561_v61 = vrot.slane %v559_v48, 5  ;;  %v2211_v27 = vrot.slane %v2203_v30, 9  ;;  %v2212_v36 = vrot.slane %v2204_v31, 9 }
  0x60   : > { %2555 = vmatprep.subr.bf16.mxu0 %v3345_v29  ;;  %1908 = vmatprep.mubr.bf16.mxu1 %v2249_v3  ;;  %v751_v13 = vrot.slane %v749_v1, 4  ;;  %v575_v19 = vrot.slane %v573_v18, 5  ;;  %v804_v37 = vrot.slane %v3305_v62, 5  ;;  %v808_v38 = vrot.slane %v3308_v63, 5  ;;  %v2205_v63 = vld [vmem:[%s2887_s12 + $0x20] sm:$0xe] }
  0x61   : > { %1909 = vmatmul.mubr.bf16.gmra.mrb[24].mxu1 %v2245_v34  ;;  %v742_v16 = vrot.slane %v741_v9, 4  ;;  %v562_v28 = vsel %vm2917_vm5, %v3268_v32, %v561_v61  ;;  %v2208_v32 = vld [vmem:[%s2887_s12 + $0x38] sm:$0xe]  ;;  %v2246_v15 = vcombine.low %v3359_v46, %v3362_v22  ;;  %v789_v62 = vsel %vm2911_vm4, %v2211_v27, %v788_v54  ;;  %v2718_v22 = vld [vmem:[%s3397_s8 + $0x8] sm:$0xff]  }
  0x62   : > { %2596 = vmatpush3.bf16.msra.mxu1 %v2710_v24  ;;  %v755_v21 = vor.u32 %v754_v47, %v751_v13  ;;  %v576_v24 = vsel %vm2917_vm5, %v3333_v17, %v575_v19  ;;  %v2216_v41 = vrot.slane %v2208_v32, 9  ;;  %v793_v56 = vsel %vm2911_vm4, %v2212_v36, %v792_v8 }
  0x63   : > { %2556 = vmatpush3.bf16.msra.mxu0 %v2713_v59  ;;  %2589 = vmatprep.subr.bf16.mxu1 %v3345_v29  ;;  %v747_v25 = vsel %vm2917_vm5, %v742_v16, %v746_v35  ;;  %v2238_v34 = vcombine.low %v562_v28, %v576_v24  ;;  %v2207_v29 = vld [vmem:[%s2887_s12 + $0x30] sm:$0xe]  ;;  %v2251_v42 = vcombine.low %v789_v62, %v793_v56  ;;  %v2213_v54 = vrot.slane %v2205_v63, 9 }
  0x64   : > { %2557 = vmatprep.subr.bf16.mxu0 %v2714_v12  ;;  %v756_v33 = vrot.slane %v755_v21, 4  ;;  %v2215_v40 = vrot.slane %v2207_v29, 9  ;;  %v809_v14 = vsel %vm2911_vm4, %v2216_v41, %v808_v38  ;;  %v796_v49 = vrot.slane %v3242_v6, 5 }
  0x65   : > { %1852 = vmatmul.mubr.bf16.gmra.mrb[28].mxu0 %v2238_v34  ;;  %v2214_v50 = vrot.slane %v2206_v26, 9  ;;  %v800_v39 = vrot.slane %v3245_v7, 5  ;;  %v2217_v60 = vrot.slane %v2209_v53, 9  ;;  %v812_v58 = vrot.slane %v3370_v23, 5 }
  0x66   : > { %2597 = vmatpush3.bf16.msra.mxu1 %v2713_v59  ;;  %v761_v17 = vsel %vm2917_vm5, %v756_v33, %v760_v51  ;;  %1957 = vmatprep.mubr.bf16.mxu0 %v2716_v20  ;;  %v805_v46 = vsel %vm2911_vm4, %v2215_v40, %v804_v37  ;;  %v2719_v59 = vld [vmem:[%s3397_s8 + $0x18] sm:$0xff]   ;;  %v797_v3 = vsel %vm2911_vm4, %v2213_v54, %v796_v49  ;;  %v2218_v4 = vrot.slane %v2210_v43, 9 }
  0x67   : > { %2558 = vmatpush3.bf16.msra.mxu0 %v2715_v0  ;;  %2590 = vmatprep.subr.bf16.mxu1 %v2714_v12  ;;  %v2250_v44 = vcombine.low %v747_v25, %v761_v17  ;;  %v2253_v57 = vcombine.low %v805_v46, %v809_v14  ;;  %v801_v2 = vsel %vm2911_vm4, %v2214_v50, %v800_v39  ;;  %v816_v6 = vrot.slane %v3373_v52, 5  ;;  %v2259_v52 = vld [vmem:[%s3480_s3] ss:$0 sm:$0xff] }
  0x68   : > { %v2252_v7 = vcombine.low %v797_v3, %v801_v2  ;;  %v813_v5 = vsel %vm2911_vm4, %v2217_v60, %v812_v58 }
  0x69   : > { %1916 = vmatprep.mubr.bf16.mxu1 %v2250_v44  ;;  %v817_v23 = vsel %vm2911_vm4, %v2218_v4, %v816_v6 }
  0x6a   : > { %2598 = vmatpush3.bf16.msra.mxu1 %v2715_v0  ;;  %v2254_v8 = vcombine.low %v813_v5, %v817_v23 }
  0x6b   : > { %1917 = vmatmul.mubr.bf16.gmra.mrb[28].mxu1 %v2246_v15 }
  0x6c   : > { %1973 = vmatprep.mubr.bf16.mxu1 %v2717_v45 }
  0x6d   : > { %1958 = vmatmul.mubr.bf16.vlgmr.msra.gmra.mrb[32].mxu0 %v2251_v42 }
  0x6e   : > { %1965 = vmatprep.mubr.bf16.mxu0 %v2718_v22 }
  0x73   : > { %1974 = vmatmul.mubr.bf16.vlgmr.msra.gmra.mrb[32].mxu1 %v2253_v57 }
  0x74   : > { %1981 = vmatprep.mubr.bf16.mxu1 %v2719_v59 }
  0x75   : > { %1966 = vmatmul.mubr.bf16.gmra.mrb[36].mxu0 %v2252_v7 }
  0x7b   : > { %1982 = vmatmul.mubr.bf16.gmra.mrb[36].mxu1 %v2254_v8 }
  0xfb   : > { %v2399_v11 = vpop.f32.mrb[0].mxu0 }
  0xfc   : > { %v2439_v1 = vpop.f32.mrb[0].mxu1  ;;  %v2400_v48 = vpop.f32.mrb[1].mxu0 }
  0xfd   : > { %v2440_v10 = vpop.f32.mrb[1].mxu1  ;;  %v2401_v12 = vadd.f32 %v2400_v48, %v2399_v11  ;;  %v2402_v13 = vpop.f32.mrb[2].mxu0 }
  0xfe   : > { %v2441_v9 = vadd.f32 %v2440_v10, %v2439_v1  ;;  %v2442_v35 = vpop.f32.mrb[2].mxu1  ;;  %v2403_v51 = vpop.f32.mrb[3].mxu0 }
  0xff   : > { %v2443_v18 = vpop.f32.mrb[3].mxu1  ;;  %v1700_v55 = vadd.f32 %v2401_v12, %v2259_v52  ;;  %v2404_v0 = vadd.f32 %v2403_v51, %v2402_v13 }
 0x100   : > { %v2444_v47 = vadd.f32 %v2443_v18, %v2442_v35 }
 0x101   : > { %v1765_v16 = vadd.f32 %v2441_v9, %v1700_v55  ;;  %v1703_v61 = vadd.f32 %v2404_v0, %v2259_v52 }
 0x103   : > { %v1768_v19 = vadd.f32 %v2444_v47, %v1703_v61  ;;  %v2405_v21 = vpop.f32.mrb[4].mxu0 }
 0x104   : > { %v2445_v20 = vpop.f32.mrb[4].mxu1  ;;  %v2406_v28 = vpop.f32.mrb[5].mxu0 }
 0x105   : > { %v2446_v25 = vpop.f32.mrb[5].mxu1  ;;  %v2407_v31 = vadd.f32 %v2406_v28, %v2405_v21  ;;  %v2408_v33 = vpop.f32.mrb[6].mxu0 }
 0x106   : > { %v2447_v24 = vadd.f32 %v2446_v25, %v2445_v20  ;;  %v2448_v30 = vpop.f32.mrb[6].mxu1  ;;  %v2409_v27 = vpop.f32.mrb[7].mxu0 }
 0x107   : > { %v2449_v34 = vpop.f32.mrb[7].mxu1  ;;  %v1708_v29 = vadd.f32 %v2407_v31, %v2259_v52  ;;  %v2410_v37 = vadd.f32 %v2409_v27, %v2408_v33 }
 0x108   : > { %v2450_v36 = vadd.f32 %v2449_v34, %v2448_v30 }
 0x109   : > { %v1773_v38 = vadd.f32 %v2447_v24, %v1708_v29  ;;  %v1711_v32 = vadd.f32 %v2410_v37, %v2259_v52 }
 0x10b   : > { %v1776_v17 = vadd.f32 %v2450_v36, %v1711_v32 }
 0x10c   : > { %v2451_v15 = vpop.f32.mrb[8].mxu1 }
 0x10d   : > { %v2411_v40 = vpop.f32.mrb[8].mxu0  ;;  %v2452_v41 = vpop.f32.mrb[9].mxu1 }
 0x10e   : > { %v2412_v44 = vpop.f32.mrb[9].mxu0  ;;  %v2453_v45 = vadd.f32 %v2452_v41, %v2451_v15  ;;  %v2454_v62 = vpop.f32.mrb[10].mxu1 }
 0x10f   : > { %v2413_v56 = vadd.f32 %v2412_v44, %v2411_v40  ;;  %v2414_v63 = vpop.f32.mrb[10].mxu0  ;;  %v2455_v26 = vpop.f32.mrb[11].mxu1 }
 0x110   : > { %v2415_v42 = vpop.f32.mrb[11].mxu0  ;;  %v2456_v46 = vadd.f32 %v2455_v26, %v2454_v62 }
 0x111   : > { %v1716_v14 = vadd.f32 %v2413_v56, %v2259_v52  ;;  %v2416_v22 = vadd.f32 %v2415_v42, %v2414_v63 }
 0x113   : > { %v1781_v54 = vadd.f32 %v2453_v45, %v1716_v14  ;;  %v1719_v49 = vadd.f32 %v2416_v22, %v2259_v52 }
 0x115   : > { %v1784_v50 = vadd.f32 %v2456_v46, %v1719_v49  ;;  %v2417_v53 = vpop.f32.mrb[12].mxu0 }
 0x116   : > { %v2457_v39 = vpop.f32.mrb[12].mxu1  ;;  %v2418_v57 = vpop.f32.mrb[13].mxu0 }
 0x117   : > { %v2458_v43 = vpop.f32.mrb[13].mxu1  ;;  %v2419_v59 = vadd.f32 %v2418_v57, %v2417_v53  ;;  %v2420_v3 = vpop.f32.mrb[14].mxu0 }
 0x118   : > { %v2459_v60 = vadd.f32 %v2458_v43, %v2457_v39  ;;  %v2460_v58 = vpop.f32.mrb[14].mxu1  ;;  %v2421_v4 = vpop.f32.mrb[15].mxu0 }
 0x119   : > { %v2461_v2 = vpop.f32.mrb[15].mxu1  ;;  %v1724_v7 = vadd.f32 %v2419_v59, %v2259_v52  ;;  %v2422_v5 = vadd.f32 %v2421_v4, %v2420_v3 }
 0x11a   : > { %v2462_v6 = vadd.f32 %v2461_v2, %v2460_v58 }
 0x11b   : > { %v1789_v23 = vadd.f32 %v2459_v60, %v1724_v7  ;;  %v1727_v8 = vadd.f32 %v2422_v5, %v2259_v52 }
 0x11d   : > { %v1792_v1 = vadd.f32 %v2462_v6, %v1727_v8  ;;  %v2479_v10 = vpop.f32.mrb[16].mxu0 }
 0x11e   : > { %v2480_v11 = vpop.f32.mrb[17].mxu0 }
 0x11f   : > { %v2481_v9 = vadd.f32 %v2480_v11, %v2479_v10  ;;  %v2482_v35 = vpop.f32.mrb[18].mxu0 }
 0x120   : > { %v2483_v48 = vpop.f32.mrb[19].mxu0  ;;  %v2519_v13 = vpop.f32.mrb[16].mxu1 }
 0x121   : > { %v1830_v18 = vadd.f32 %v2481_v9, %v1765_v16  ;;  %v2484_v12 = vadd.f32 %v2483_v48, %v2482_v35  ;;  %v2520_v51 = vpop.f32.mrb[17].mxu1 }
 0x122   : > { %v2521_v55 = vadd.f32 %v2520_v51, %v2519_v13  ;;  %v2522_v0 = vpop.f32.mrb[18].mxu1 }
 0x123   : > { %v1833_v47 = vadd.f32 %v2484_v12, %v1768_v19  ;;  %v2523_v61 = vpop.f32.mrb[19].mxu1 }
 0x124   : > { %v1895_v20 = vadd.f32 %v2521_v55, %v1830_v18  ;;  %v2524_v21 = vadd.f32 %v2523_v61, %v2522_v0 }
 0x126   : > { %v1898_v25 = vadd.f32 %v2524_v21, %v1833_v47 }
 0x127   : > { %v2485_v28 = vpop.f32.mrb[20].mxu0 }
 0x128   : > { %v2486_v24 = vpop.f32.mrb[21].mxu0 }
 0x129   : > { %v2487_v52 = vadd.f32 %v2486_v24, %v2485_v28  ;;  %v2488_v30 = vpop.f32.mrb[22].mxu0 }
 0x12a   : > { %v2489_v31 = vpop.f32.mrb[23].mxu0 }
 0x12b   : > { %v2525_v33 = vpop.f32.mrb[20].mxu1  ;;  %v1838_v34 = vadd.f32 %v2487_v52, %v1773_v38  ;;  %v2490_v27 = vadd.f32 %v2489_v31, %v2488_v30 }
 0x12c   : > { %v2526_v36 = vpop.f32.mrb[21].mxu1 }
 0x12d   : > { %v2527_v16 = vadd.f32 %v2526_v36, %v2525_v33  ;;  %v2528_v29 = vpop.f32.mrb[22].mxu1  ;;  %v1841_v37 = vadd.f32 %v2490_v27, %v1776_v17 }
 0x12e   : > { %v2529_v19 = vpop.f32.mrb[23].mxu1 }
 0x12f   : > { %v3457_v32 = vadd.f32 %v2527_v16, %v1838_v34  ;;  %v2530_v15 = vadd.f32 %v2529_v19, %v2528_v29  ;;  %v2491_v41 = vpop.f32.mrb[24].mxu0 }
 0x130   : > { %v2492_v44 = vpop.f32.mrb[25].mxu0 }
 0x131   : > { %v3459_v40 = vadd.f32 %v2530_v15, %v1841_v37  ;;  %v2493_v62 = vadd.f32 %v2492_v44, %v2491_v41  ;;  %v2494_v56 = vpop.f32.mrb[26].mxu0 }
 0x132   : > { %v2495_v26 = vpop.f32.mrb[27].mxu0 }
 0x133   : > { %v1846_v42 = vadd.f32 %v2493_v62, %v1781_v54  ;;  %v2496_v14 = vadd.f32 %v2495_v26, %v2494_v56 }
 0x134   : > { %v2531_v45 = vpop.f32.mrb[24].mxu1 }
 0x135   : > { %v2532_v63 = vpop.f32.mrb[25].mxu1  ;;  %v1849_v17 = vadd.f32 %v2496_v14, %v1784_v50 }
 0x136   : > { %v2533_v38 = vadd.f32 %v2532_v63, %v2531_v45  ;;  %v2534_v46 = vpop.f32.mrb[26].mxu1 }
 0x137   : > { %v2535_v22 = vpop.f32.mrb[27].mxu1 }
 0x138   : > { %v1911_v49 = vadd.f32 %v2533_v38, %v1846_v42  ;;  %v2536_v39 = vadd.f32 %v2535_v22, %v2534_v46  ;;  %v2497_v43 = vpop.f32.mrb[28].mxu0 }
 0x139   : > { %v2498_v57 = vpop.f32.mrb[29].mxu0 }
 0x13a   : > { %v1914_v53 = vadd.f32 %v2536_v39, %v1849_v17  ;;  %v2499_v60 = vadd.f32 %v2498_v57, %v2497_v43  ;;  %v2500_v58 = vpop.f32.mrb[30].mxu0 }
 0x13b   : > { %v2501_v59 = vpop.f32.mrb[31].mxu0 }
 0x13c   : > { %v1854_v2 = vadd.f32 %v2499_v60, %v1789_v23  ;;  %v2502_v4 = vadd.f32 %v2501_v59, %v2500_v58 }
 0x13e   : > { %v2537_v3 = vpop.f32.mrb[28].mxu1  ;;  %v1857_v54 = vadd.f32 %v2502_v4, %v1792_v1 }
 0x13f   : > { %v2538_v6 = vpop.f32.mrb[29].mxu1 }
 0x140   : > { %v2539_v7 = vadd.f32 %v2538_v6, %v2537_v3  ;;  %v2540_v5 = vpop.f32.mrb[30].mxu1  ;;  %v2559_v9 = vpop.f32.mrb[32].mxu0 }
 0x141   : > { %v2541_v8 = vpop.f32.mrb[31].mxu1  ;;  %v2560_v35 = vpop.f32.mrb[33].mxu0 }
 0x142   : > { %v1919_v10 = vadd.f32 %v2539_v7, %v1854_v2  ;;  %v2542_v11 = vadd.f32 %v2541_v8, %v2540_v5  ;;  %v2561_v48 = vadd.f32 %v2560_v35, %v2559_v9  ;;  %v2562_v18 = vpop.f32.mrb[34].mxu0 }
 0x143   : > { %v2563_v12 = vpop.f32.mrb[35].mxu0 }
 0x144   : > { %v1922_v50 = vadd.f32 %v2542_v11, %v1857_v54  ;;  %v1960_v47 = vadd.f32 %v2561_v48, %v1895_v20  ;;  %v2564_v51 = vadd.f32 %v2563_v12, %v2562_v18 }
 0x146   : > { %v2571_v13 = vpop.f32.mrb[32].mxu1  ;;  %v1963_v61 = vadd.f32 %v2564_v51, %v1898_v25  ;;  %v1990_v28 = vmax.f32 %v1960_v47, 0.0 }
 0x147   : > { %v2572_v55 = vpop.f32.mrb[33].mxu1 }
 0x148   : > { %v2573_v23 = vadd.f32 %v2572_v55, %v2571_v13  ;;  %v2574_v0 = vpop.f32.mrb[34].mxu1  ;;  %v1991_v24 = vmax.f32 %v1963_v61, 0.0  ;;  %v2565_v30 = vpop.f32.mrb[36].mxu0 }
 0x149   : > { %v2575_v21 = vpop.f32.mrb[35].mxu1  ;;  %v2566_v31 = vpop.f32.mrb[37].mxu0 }
 0x14a   : > { %v1976_v1 = vadd.f32 %v2573_v23, %v1911_v49  ;;  %v2576_v52 = vadd.f32 %v2575_v21, %v2574_v0  ;;  %v2363_v33 = vpack.c.bf16 %v1991_v24, %v1990_v28  ;;  %v2567_v20 = vadd.f32 %v2566_v31, %v2565_v30  ;;  %v2568_v27 = vpop.f32.mrb[38].mxu0 }
 0x14b   : > { %v2569_v36 = vpop.f32.mrb[39].mxu0 }
 0x14c   : > { %v1979_v34 = vadd.f32 %v2576_v52, %v1914_v53  ;;  %v1994_v16 = vmax.f32 %v1976_v1, 0.0  ;;  %2364 = vst [vmem:[%s255_s21] sm:$0xff] %v2363_v33   ;;  %v1968_v37 = vadd.f32 %v2567_v20, %v3457_v32  ;;  %v2570_v19 = vadd.f32 %v2569_v36, %v2568_v27 }
 0x14e   : > { %v1995_v25 = vmax.f32 %v1979_v34, 0.0  ;;  %v2577_v29 = vpop.f32.mrb[36].mxu1  ;;  %v1971_v62 = vadd.f32 %v2570_v19, %v3459_v40  ;;  %v1992_v63 = vmax.f32 %v1968_v37, 0.0 }
 0x14f   : > { %v2578_v15 = vpop.f32.mrb[37].mxu1 }
 0x150   : > { %v2373_v41 = vpack.c.bf16 %v1995_v25, %v1994_v16  ;;  %v2579_v44 = vadd.f32 %v2578_v15, %v2577_v29  ;;  %v2580_v45 = vpop.f32.mrb[38].mxu1  ;;  %v1993_v42 = vmax.f32 %v1971_v62, 0.0 }
 0x151   : > { %v2581_v56 = vpop.f32.mrb[39].mxu1 }
 0x152   : > { %2381 = vst [vmem:[%s255_s21 + $0x10] sm:$0xff] %v2373_v41   ;;  %v1984_v26 = vadd.f32 %v2579_v44, %v1919_v10  ;;  %v2582_v38 = vadd.f32 %v2581_v56, %v2580_v45  ;;  %v2368_v46 = vpack.c.bf16 %v1993_v42, %v1992_v63 }
 0x154   : > { %v1987_v14 = vadd.f32 %v2582_v38, %v1922_v50  ;;  %v1996_v22 = vmax.f32 %v1984_v26, 0.0  ;;  %2380 = vst [vmem:[%s255_s21 + $0x8] sm:$0xff] %v2368_v46  }
 0x156   : > { %v1997_v49 = vmax.f32 %v1987_v14, 0.0 }
 0x158   : > { %v2378_v17 = vpack.c.bf16 %v1997_v49, %v1996_v22 }
 0x15a   : > { %2382 = vst [vmem:[%s255_s21 + $0x18] sm:$0xff] %v2378_v17  }
 0x15b PF: > { %s14_s17 = sadd.s32 1, %s2742_s17   ;;  %s3486_s15 = smov %s2738_s16 }
 0x15c   : > { %p11_p5 = scmp.ge.s32.totalorder %s14_s17, 4   ;;  %s3487_s16 = smov %s3489_s18 }
 0x15e   :  { %13 = sbr.rel (!%p11_p5) target bundleno = 2 (0x2), region = 71 }

</bundles_post_ra>
